<compile_context>
chip_gen: v7x
topology: tpu7x:2x2x1
jax: 0.10.0
libtpu: 0.0.40
codegen_flags: <defaults>
</compile_context>

<pallas_src>
import jax
import jax.numpy as jnp
from jax import lax
from jax.experimental import pallas as pl
from jax.experimental.pallas import tpu as pltpu

# Images per grid step.  24*TB = matmul M for conv1 (768 at TB=32).  Per-step
# VMEM stays ~3 MB, far under every generation's limit; TB=32 keeps all row
# slices on 16-row (bf16 tile) boundaries.  For very large batches TB can be
# raised (keep grid length >= 2 and even on v7x so both TensorCores get work).
TB = 32


# ----------------------------- fused kernel --------------------------------


def _net_kernel(lhs1_ref, b1m_ref, bias1_ref, b2m_ref, bias2_ref,
                wf1_ref, bf1_ref, wf2_ref, bf2_ref, out_ref):
    bf16, f32 = jnp.bfloat16, jnp.float32

    # ---- conv1 for the whole tile: ONE batched MXU matmul (M = 24*TB) ----
    # lhs1 rows are ordered (conv-row parity g, pooled row m, image b);
    # B1 columns are (col parity h)*128 + n*10 + co (120 real + 8 pad lanes).
    h1 = jnp.dot(lhs1_ref[...], b1m_ref[...],
                 preferred_element_type=f32)                  # (24*TB, 256)
    v1 = jnp.maximum(h1[:12 * TB, :], h1[12 * TB:, :])        # vertical 2x2 pool
    p1 = jnp.maximum(v1[:, :128], v1[:, 128:])                # horizontal 2x2 pool
    h1p = jnp.maximum(p1 + bias1_ref[...], 0.0).astype(bf16)  # (12*TB, 128) rows=(m,b)

    # ---- conv2 LHS: per (parity g, pooled row m2), lane-concat 5 contiguous
    # (TB, 128) row blocks of h1p (K padded to 5*128 = 640, zero weight rows
    # at the pad lanes).  All slices/concats are full-vreg aligned.
    blocks = []
    for g in range(2):            # conv2 output row parity
        for m2 in range(4):       # pooled conv2 row
            i2 = 2 * m2 + g
            blocks.append(jnp.concatenate(
                [h1p[(i2 + ki) * TB:(i2 + ki + 1) * TB, :] for ki in range(5)],
                axis=1))                                      # (TB, 640)
    lhs2 = jnp.concatenate(blocks, axis=0)                    # (8*TB, 640)

    h2 = jnp.dot(lhs2, b2m_ref[...],
                 preferred_element_type=f32)                  # (8*TB, 256)
    v2 = jnp.maximum(h2[:4 * TB, :], h2[4 * TB:, :])          # vertical pool
    p2 = jnp.maximum(v2[:, :128], v2[:, 128:])                # horizontal pool
    h2p = jnp.maximum(p2 + bias2_ref[...], 0.0)               # (4*TB, 128) rows=(m2,b)

    # ---- flatten (lane concat of the 4 pooled-row blocks) + fc1 + relu ----
    xflat = jnp.concatenate([h2p[m2 * TB:(m2 + 1) * TB, :] for m2 in range(4)],
                            axis=1).astype(bf16)              # (TB, 512)
    f1 = jnp.dot(xflat, wf1_ref[...], preferred_element_type=f32) + bf1_ref[...]
    f1 = jnp.maximum(f1, 0.0)                                 # (TB, 128), lanes>=50 are 0

    # ---- fc2 + softmax (pad logit lanes carry -1e30 bias -> exp == 0) ----
    logits = (jnp.dot(f1.astype(bf16), wf2_ref[...],
                      preferred_element_type=f32) + bf2_ref[...])  # (TB, 128)
    z = logits - jnp.max(logits, axis=-1, keepdims=True)
    e = jnp.exp(z)
    s = jnp.sum(e, axis=-1, keepdims=True)
    inv = pl.reciprocal(s, approx=True)        # EUP slot
    inv = inv * (2.0 - s * inv)                # one Newton step -> ~f32 exact
    out_ref[...] = e * inv                     # lane-dense (TB, 128) store


# ------------------------- weight repacking (once) -------------------------


def prepare_params(params):
    """One-time repack of PyTorch-layout weights into MXU-friendly operands:
    banded conv matrices with pool-friendly column order, re-indexed fc1,
    lane-padded N dims, bf16 matmul operands, f32 biases."""
    f32, bf16 = jnp.float32, jnp.bfloat16
    w1 = params["w1"].astype(f32)          # (10, 1, 5, 5)  (co, ci, ki, kj)
    w2 = params["w2"].astype(f32)          # (20, 10, 5, 5) (co, ci, ki, kj)

    # conv1 banded matrix B1 (K=140, N=256):
    #   row  = ki*28 + p          (p = input col)
    #   col  = h*128 + n*10 + co  (conv col j = 2n + h; lanes 120..127 are 0)
    #   B1[row, col] = w1[co, 0, ki, p - j]  if 0 <= p - j < 5 else 0
    m1 = (jnp.arange(28)[None, :, None] ==
          (jnp.arange(24)[None, None, :] +
           jnp.arange(5)[:, None, None])).astype(f32)         # (kj, p, j)
    band1 = jnp.einsum("qpj,okq->kpjo", m1, w1[:, 0, :, :])   # (5,28,24,10)
    band1 = band1.reshape(5, 28, 12, 2, 10).transpose(0, 1, 3, 2, 4)  # (5,28,2,12,10)
    band1 = band1.reshape(140, 2, 120)
    band1 = jnp.pad(band1, ((0, 0), (0, 0), (0, 8))).reshape(140, 256).astype(bf16)

    # conv2 banded matrix B2 (K=640, N=256):
    #   row = ki*128 + n*10 + ci          (n = pooled conv1 col; lanes 120..127 pad)
    #   col = h2*128 + j2*20 + co         (conv2 col j = 2*j2 + h2; 80..127 pad)
    #   B2[row, col] = w2[co, ci, ki, n - j]  if 0 <= n - j < 5 else 0
    m2 = (jnp.arange(12)[None, :, None] ==
          (jnp.arange(8)[None, None, :] +
           jnp.arange(5)[:, None, None])).astype(f32)          # (kj, n, j)
    band2 = jnp.einsum("qnj,ockq->kncjo", m2, w2)              # (5,12,10,8,20)
    band2 = band2.reshape(5, 120, 8, 20)
    band2 = jnp.pad(band2, ((0, 0), (0, 8), (0, 0), (0, 0)))   # (5,128,8,20)
    band2 = band2.reshape(640, 4, 2, 20).transpose(0, 2, 1, 3) # (640,2,4,20)
    band2 = band2.reshape(640, 2, 80)
    band2 = jnp.pad(band2, ((0, 0), (0, 0), (0, 48))).reshape(640, 256).astype(bf16)

    # biases are applied after pooling; lane order matches pooled column order.
    bias1 = jnp.pad(jnp.tile(params["b1"].astype(f32), 12), (0, 8)).reshape(1, 128)
    bias2 = jnp.pad(jnp.tile(params["b2"].astype(f32), 4), (0, 48)).reshape(1, 128)

    # fc1 weights re-indexed to the in-kernel flatten order:
    #   xflat lane = m2*128 + j2*20 + co  <->  PyTorch flat idx = co*16 + m2*4 + j2
    wf1 = params["wf1"].astype(f32).reshape(50, 20, 4, 4)      # (u, co, i2, j2)
    wf1 = wf1.transpose(2, 3, 1, 0).reshape(4, 80, 50)         # (i2, j2*20+co, u)
    wf1 = jnp.pad(wf1, ((0, 0), (0, 48), (0, 0))).reshape(512, 50)
    wf1 = jnp.pad(wf1, ((0, 0), (0, 78))).astype(bf16)         # (512, 128)
    bf1 = jnp.pad(params["bf1"].astype(f32), (0, 78)).reshape(1, 128)

    wf2 = jnp.pad(params["wf2"].astype(f32).T, ((0, 78), (0, 118))).astype(bf16)  # (128,128)
    # pad logit lanes get a huge negative bias so exp() of them is exactly 0.
    bf2 = jnp.full((128,), -1e30, f32).at[:10].set(params["bf2"].astype(f32)).reshape(1, 128)

    return {"b1m": band1, "bias1": bias1, "b2m": band2, "bias2": bias2,
            "wf1": wf1, "bf1": bf1, "wf2": wf2, "bf2": bf2}


# ------------------------------- wrapper ------------------------------------


def _const_spec(shape):
    zeros = (0,) * len(shape)
    return pl.BlockSpec(shape, lambda t, _z=zeros: _z)


def net_forward(x_nchw, prep):
    B = x_nchw.shape[0]
    x = x_nchw.reshape(B, 28, 28).astype(jnp.float32)
    Bp = ((B + TB - 1) // TB) * TB
    if Bp != B:
        x = jnp.pad(x, ((0, Bp - B), (0, 0), (0, 0)))
    ntile = Bp // TB

    # conv1 im2col in XLA (feedback: biggest single lever).  K index = ki*28+p.
    win = jnp.concatenate([x[:, ki:ki + 24, :] for ki in range(5)], axis=2)  # (Bp,24,140)
    # Reorder rows per tile to (conv-row parity g, pooled row m, image b).
    win = win.reshape(ntile, TB, 12, 2, 140)          # conv row i = 2*m + g
    lhs1 = win.transpose(0, 3, 2, 1, 4).reshape(ntile * 24 * TB, 140)
    lhs1 = lhs1.astype(jnp.bfloat16)

    out = pl.pallas_call(
        _net_kernel,
        out_shape=jax.ShapeDtypeStruct((Bp, 128), jnp.float32),
        grid=(ntile,),
        in_specs=[
            pl.BlockSpec((24 * TB, 140), lambda t: (t, 0)),
            _const_spec(prep["b1m"].shape),
            _const_spec(prep["bias1"].shape),
            _const_spec(prep["b2m"].shape),
            _const_spec(prep["bias2"].shape),
            _const_spec(prep["wf1"].shape),
            _const_spec(prep["bf1"].shape),
            _const_spec(prep["wf2"].shape),
            _const_spec(prep["bf2"].shape),
        ],
        out_specs=pl.BlockSpec((TB, 128), lambda t: (t, 0)),
        compiler_params=pltpu.CompilerParams(
            dimension_semantics=("parallel",),
        ),
    )(lhs1, prep["b1m"], prep["bias1"], prep["b2m"], prep["bias2"],
      prep["wf1"], prep["bf1"], prep["wf2"], prep["bf2"])
    return out[:B, :10]


# --------------------------- pure-JAX reference ------------------------------


def net_reference(x_nchw, params):
    """Straight f32 re-implementation of the PyTorch forward (eval mode)."""
    dn = ("NCHW", "OIHW", "NCHW")
    x = x_nchw.astype(jnp.float32)
    y = lax.conv_general_dilated(x, params["w1"], (1, 1), "VALID",
                                 dimension_numbers=dn) + params["b1"][None, :, None, None]
    y = lax.reduce_window(y, -jnp.inf, lax.max, (1, 1, 2, 2), (1, 1, 2, 2), "VALID")
    y = jnp.maximum(y, 0.0)
    y = lax.conv_general_dilated(y, params["w2"], (1, 1), "VALID",
                                 dimension_numbers=dn) + params["b2"][None, :, None, None]
    y = lax.reduce_window(y, -jnp.inf, lax.max, (1, 1, 2, 2), (1, 1, 2, 2), "VALID")
    y = jnp.maximum(y, 0.0)
    y = y.reshape(y.shape[0], 320)
    y = jnp.maximum(y @ params["wf1"].T + params["bf1"], 0.0)
    logits = y @ params["wf2"].T + params["bf2"]
    return jax.nn.softmax(logits, axis=-1)


def init_params(key):
    ks = jax.random.split(key, 8)

    def u(k, shape, fan_in):
        bound = 1.0 / jnp.sqrt(jnp.float32(fan_in))
        return jax.random.uniform(k, shape, jnp.float32, -bound, bound)

    return {
        "w1": u(ks[0], (10, 1, 5, 5), 25),    # conv1.weight
        "b1": u(ks[1], (10,), 25),            # conv1.bias
        "w2": u(ks[2], (20, 10, 5, 5), 250),  # conv2.weight
        "b2": u(ks[3], (20,), 250),           # conv2.bias
        "wf1": u(ks[4], (50, 320), 320),      # fc1.weight
        "bf1": u(ks[5], (50,), 320),          # fc1.bias
        "wf2": u(ks[6], (10, 50), 50),        # fc2.weight
        "bf2": u(ks[7], (10,), 50),           # fc2.bias
    }


if __name__ == "__main__":
    key = jax.random.PRNGKey(0)
    k_x, k_p = jax.random.split(key)
    x = jax.random.normal(k_x, (2, 1, 28, 28), dtype=jnp.float32)  # NCHW like PyTorch
    params = init_params(k_p)
    prep = prepare_params(params)   # one-time weight repacking (outside hot path)

    fwd = jax.jit(net_forward)
    out = jax.block_until_ready(fwd(x, prep))

    assert out.shape == (2, 10)
    assert bool(jnp.all(jnp.isfinite(out)))
    # softmax rows must sum to ~1
    assert jnp.allclose(jnp.sum(out, axis=-1), 1.0, atol=1e-4)

    # tolerance check against the pure-JAX f32 reference (bf16 MXU operands).
    ref = jax.jit(net_reference)(x, params)
    err = float(jnp.max(jnp.abs(out - ref)))
    assert err < 2e-2, f"mismatch vs reference: max abs err = {err}"
    print("KERNEL_OK")
</pallas_src>

<mosaic_0001>
module attributes {stable_mosaic.version = 11 : i64} {
  func.func @_net_kernel(%arg0: i32, %arg1: memref<768x140xbf16, #tpu.memory_space<vmem>>, %arg2: memref<140x256xbf16, #tpu.memory_space<vmem>>, %arg3: memref<1x128xf32, #tpu.memory_space<vmem>>, %arg4: memref<640x256xbf16, #tpu.memory_space<vmem>>, %arg5: memref<1x128xf32, #tpu.memory_space<vmem>>, %arg6: memref<512x128xbf16, #tpu.memory_space<vmem>>, %arg7: memref<1x128xf32, #tpu.memory_space<vmem>>, %arg8: memref<128x128xbf16, #tpu.memory_space<vmem>>, %arg9: memref<1x128xf32, #tpu.memory_space<vmem>>, %arg10: memref<32x128xf32, #tpu.memory_space<vmem>>) attributes {dimension_semantics = [#tpu.dimension_semantics<parallel>], iteration_bounds = array<i64: 1>, scalar_prefetch = 0 : i64, scratch_operands = 0 : i64, tpu.core_type = #tpu.core_type<tc>, window_params = [{transform_indices = @transform_0, window_bounds = array<i64: 768, 140>}, {pipeline_mode = #tpu.pipeline_mode<synchronous>, transform_indices = @transform_1, window_bounds = array<i64: 140, 256>}, {pipeline_mode = #tpu.pipeline_mode<synchronous>, transform_indices = @transform_2, window_bounds = array<i64: 1, 128>}, {pipeline_mode = #tpu.pipeline_mode<synchronous>, transform_indices = @transform_3, window_bounds = array<i64: 640, 256>}, {pipeline_mode = #tpu.pipeline_mode<synchronous>, transform_indices = @transform_4, window_bounds = array<i64: 1, 128>}, {pipeline_mode = #tpu.pipeline_mode<synchronous>, transform_indices = @transform_5, window_bounds = array<i64: 512, 128>}, {pipeline_mode = #tpu.pipeline_mode<synchronous>, transform_indices = @transform_6, window_bounds = array<i64: 1, 128>}, {pipeline_mode = #tpu.pipeline_mode<synchronous>, transform_indices = @transform_7, window_bounds = array<i64: 128, 128>}, {pipeline_mode = #tpu.pipeline_mode<synchronous>, transform_indices = @transform_8, window_bounds = array<i64: 1, 128>}, {transform_indices = @transform_9, window_bounds = array<i64: 32, 128>}]} {
    %c0 = arith.constant 0 : index
    %c0_0 = arith.constant 0 : index
    %0 = vector.load %arg1[%c0, %c0_0] : memref<768x140xbf16, #tpu.memory_space<vmem>>, vector<768x140xbf16>
    %c0_1 = arith.constant 0 : index
    %c0_2 = arith.constant 0 : index
    %1 = vector.load %arg2[%c0_1, %c0_2] : memref<140x256xbf16, #tpu.memory_space<vmem>>, vector<140x256xbf16>
    %cst = arith.constant dense<0.000000e+00> : vector<768x256xf32>
    %2 = tpu.matmul %0, %1, %cst {dimension_numbers = #tpu.dot_dimension_numbers<[1], [0], [0], [1], [0, 0, 1, 1], [], []>} : vector<768x140xbf16>, vector<140x256xbf16>, vector<768x256xf32> -> vector<768x256xf32>
    %3 = vector.extract_strided_slice %2 {offsets = [0, 0], sizes = [384, 256], strides = [1, 1]} : vector<768x256xf32> to vector<384x256xf32>
    %4 = vector.extract_strided_slice %2 {offsets = [384, 0], sizes = [384, 256], strides = [1, 1]} : vector<768x256xf32> to vector<384x256xf32>
    %5 = arith.maximumf %3, %4 : vector<384x256xf32>
    %6 = vector.extract_strided_slice %5 {offsets = [0, 0], sizes = [384, 128], strides = [1, 1]} : vector<384x256xf32> to vector<384x128xf32>
    %7 = vector.extract_strided_slice %5 {offsets = [0, 128], sizes = [384, 128], strides = [1, 1]} : vector<384x256xf32> to vector<384x128xf32>
    %8 = arith.maximumf %6, %7 : vector<384x128xf32>
    %c0_3 = arith.constant 0 : index
    %c0_4 = arith.constant 0 : index
    %9 = vector.load %arg3[%c0_3, %c0_4] : memref<1x128xf32, #tpu.memory_space<vmem>>, vector<1x128xf32>
    %10 = vector.broadcast %9 : vector<1x128xf32> to vector<384x128xf32>
    %11 = arith.addf %8, %10 : vector<384x128xf32>
    %cst_5 = arith.constant 0.000000e+00 : f32
    %12 = vector.broadcast %cst_5 : f32 to vector<384x128xf32>
    %13 = arith.maximumf %11, %12 : vector<384x128xf32>
    %14 = arith.truncf %13 : vector<384x128xf32> to vector<384x128xbf16>
    %15 = vector.extract_strided_slice %14 {offsets = [0, 0], sizes = [32, 128], strides = [1, 1]} : vector<384x128xbf16> to vector<32x128xbf16>
    %16 = vector.extract_strided_slice %14 {offsets = [32, 0], sizes = [32, 128], strides = [1, 1]} : vector<384x128xbf16> to vector<32x128xbf16>
    %17 = vector.extract_strided_slice %14 {offsets = [64, 0], sizes = [32, 128], strides = [1, 1]} : vector<384x128xbf16> to vector<32x128xbf16>
    %18 = vector.extract_strided_slice %14 {offsets = [96, 0], sizes = [32, 128], strides = [1, 1]} : vector<384x128xbf16> to vector<32x128xbf16>
    %19 = vector.extract_strided_slice %14 {offsets = [128, 0], sizes = [32, 128], strides = [1, 1]} : vector<384x128xbf16> to vector<32x128xbf16>
    %20 = tpu.concatenate %15, %16, %17, %18, %19 in 1 : vector<32x128xbf16>, vector<32x128xbf16>, vector<32x128xbf16>, vector<32x128xbf16>, vector<32x128xbf16> -> vector<32x640xbf16>
    %21 = vector.extract_strided_slice %14 {offsets = [64, 0], sizes = [32, 128], strides = [1, 1]} : vector<384x128xbf16> to vector<32x128xbf16>
    %22 = vector.extract_strided_slice %14 {offsets = [96, 0], sizes = [32, 128], strides = [1, 1]} : vector<384x128xbf16> to vector<32x128xbf16>
    %23 = vector.extract_strided_slice %14 {offsets = [128, 0], sizes = [32, 128], strides = [1, 1]} : vector<384x128xbf16> to vector<32x128xbf16>
    %24 = vector.extract_strided_slice %14 {offsets = [160, 0], sizes = [32, 128], strides = [1, 1]} : vector<384x128xbf16> to vector<32x128xbf16>
    %25 = vector.extract_strided_slice %14 {offsets = [192, 0], sizes = [32, 128], strides = [1, 1]} : vector<384x128xbf16> to vector<32x128xbf16>
    %26 = tpu.concatenate %21, %22, %23, %24, %25 in 1 : vector<32x128xbf16>, vector<32x128xbf16>, vector<32x128xbf16>, vector<32x128xbf16>, vector<32x128xbf16> -> vector<32x640xbf16>
    %27 = vector.extract_strided_slice %14 {offsets = [128, 0], sizes = [32, 128], strides = [1, 1]} : vector<384x128xbf16> to vector<32x128xbf16>
    %28 = vector.extract_strided_slice %14 {offsets = [160, 0], sizes = [32, 128], strides = [1, 1]} : vector<384x128xbf16> to vector<32x128xbf16>
    %29 = vector.extract_strided_slice %14 {offsets = [192, 0], sizes = [32, 128], strides = [1, 1]} : vector<384x128xbf16> to vector<32x128xbf16>
    %30 = vector.extract_strided_slice %14 {offsets = [224, 0], sizes = [32, 128], strides = [1, 1]} : vector<384x128xbf16> to vector<32x128xbf16>
    %31 = vector.extract_strided_slice %14 {offsets = [256, 0], sizes = [32, 128], strides = [1, 1]} : vector<384x128xbf16> to vector<32x128xbf16>
    %32 = tpu.concatenate %27, %28, %29, %30, %31 in 1 : vector<32x128xbf16>, vector<32x128xbf16>, vector<32x128xbf16>, vector<32x128xbf16>, vector<32x128xbf16> -> vector<32x640xbf16>
    %33 = vector.extract_strided_slice %14 {offsets = [192, 0], sizes = [32, 128], strides = [1, 1]} : vector<384x128xbf16> to vector<32x128xbf16>
    %34 = vector.extract_strided_slice %14 {offsets = [224, 0], sizes = [32, 128], strides = [1, 1]} : vector<384x128xbf16> to vector<32x128xbf16>
    %35 = vector.extract_strided_slice %14 {offsets = [256, 0], sizes = [32, 128], strides = [1, 1]} : vector<384x128xbf16> to vector<32x128xbf16>
    %36 = vector.extract_strided_slice %14 {offsets = [288, 0], sizes = [32, 128], strides = [1, 1]} : vector<384x128xbf16> to vector<32x128xbf16>
    %37 = vector.extract_strided_slice %14 {offsets = [320, 0], sizes = [32, 128], strides = [1, 1]} : vector<384x128xbf16> to vector<32x128xbf16>
    %38 = tpu.concatenate %33, %34, %35, %36, %37 in 1 : vector<32x128xbf16>, vector<32x128xbf16>, vector<32x128xbf16>, vector<32x128xbf16>, vector<32x128xbf16> -> vector<32x640xbf16>
    %39 = vector.extract_strided_slice %14 {offsets = [32, 0], sizes = [32, 128], strides = [1, 1]} : vector<384x128xbf16> to vector<32x128xbf16>
    %40 = vector.extract_strided_slice %14 {offsets = [64, 0], sizes = [32, 128], strides = [1, 1]} : vector<384x128xbf16> to vector<32x128xbf16>
    %41 = vector.extract_strided_slice %14 {offsets = [96, 0], sizes = [32, 128], strides = [1, 1]} : vector<384x128xbf16> to vector<32x128xbf16>
    %42 = vector.extract_strided_slice %14 {offsets = [128, 0], sizes = [32, 128], strides = [1, 1]} : vector<384x128xbf16> to vector<32x128xbf16>
    %43 = vector.extract_strided_slice %14 {offsets = [160, 0], sizes = [32, 128], strides = [1, 1]} : vector<384x128xbf16> to vector<32x128xbf16>
    %44 = tpu.concatenate %39, %40, %41, %42, %43 in 1 : vector<32x128xbf16>, vector<32x128xbf16>, vector<32x128xbf16>, vector<32x128xbf16>, vector<32x128xbf16> -> vector<32x640xbf16>
    %45 = vector.extract_strided_slice %14 {offsets = [96, 0], sizes = [32, 128], strides = [1, 1]} : vector<384x128xbf16> to vector<32x128xbf16>
    %46 = vector.extract_strided_slice %14 {offsets = [128, 0], sizes = [32, 128], strides = [1, 1]} : vector<384x128xbf16> to vector<32x128xbf16>
    %47 = vector.extract_strided_slice %14 {offsets = [160, 0], sizes = [32, 128], strides = [1, 1]} : vector<384x128xbf16> to vector<32x128xbf16>
    %48 = vector.extract_strided_slice %14 {offsets = [192, 0], sizes = [32, 128], strides = [1, 1]} : vector<384x128xbf16> to vector<32x128xbf16>
    %49 = vector.extract_strided_slice %14 {offsets = [224, 0], sizes = [32, 128], strides = [1, 1]} : vector<384x128xbf16> to vector<32x128xbf16>
    %50 = tpu.concatenate %45, %46, %47, %48, %49 in 1 : vector<32x128xbf16>, vector<32x128xbf16>, vector<32x128xbf16>, vector<32x128xbf16>, vector<32x128xbf16> -> vector<32x640xbf16>
    %51 = vector.extract_strided_slice %14 {offsets = [160, 0], sizes = [32, 128], strides = [1, 1]} : vector<384x128xbf16> to vector<32x128xbf16>
    %52 = vector.extract_strided_slice %14 {offsets = [192, 0], sizes = [32, 128], strides = [1, 1]} : vector<384x128xbf16> to vector<32x128xbf16>
    %53 = vector.extract_strided_slice %14 {offsets = [224, 0], sizes = [32, 128], strides = [1, 1]} : vector<384x128xbf16> to vector<32x128xbf16>
    %54 = vector.extract_strided_slice %14 {offsets = [256, 0], sizes = [32, 128], strides = [1, 1]} : vector<384x128xbf16> to vector<32x128xbf16>
    %55 = vector.extract_strided_slice %14 {offsets = [288, 0], sizes = [32, 128], strides = [1, 1]} : vector<384x128xbf16> to vector<32x128xbf16>
    %56 = tpu.concatenate %51, %52, %53, %54, %55 in 1 : vector<32x128xbf16>, vector<32x128xbf16>, vector<32x128xbf16>, vector<32x128xbf16>, vector<32x128xbf16> -> vector<32x640xbf16>
    %57 = vector.extract_strided_slice %14 {offsets = [224, 0], sizes = [32, 128], strides = [1, 1]} : vector<384x128xbf16> to vector<32x128xbf16>
    %58 = vector.extract_strided_slice %14 {offsets = [256, 0], sizes = [32, 128], strides = [1, 1]} : vector<384x128xbf16> to vector<32x128xbf16>
    %59 = vector.extract_strided_slice %14 {offsets = [288, 0], sizes = [32, 128], strides = [1, 1]} : vector<384x128xbf16> to vector<32x128xbf16>
    %60 = vector.extract_strided_slice %14 {offsets = [320, 0], sizes = [32, 128], strides = [1, 1]} : vector<384x128xbf16> to vector<32x128xbf16>
    %61 = vector.extract_strided_slice %14 {offsets = [352, 0], sizes = [32, 128], strides = [1, 1]} : vector<384x128xbf16> to vector<32x128xbf16>
    %62 = tpu.concatenate %57, %58, %59, %60, %61 in 1 : vector<32x128xbf16>, vector<32x128xbf16>, vector<32x128xbf16>, vector<32x128xbf16>, vector<32x128xbf16> -> vector<32x640xbf16>
    %63 = tpu.concatenate %20, %26, %32, %38, %44, %50, %56, %62 in 0 : vector<32x640xbf16>, vector<32x640xbf16>, vector<32x640xbf16>, vector<32x640xbf16>, vector<32x640xbf16>, vector<32x640xbf16>, vector<32x640xbf16>, vector<32x640xbf16> -> vector<256x640xbf16>
    %c0_6 = arith.constant 0 : index
    %c0_7 = arith.constant 0 : index
    %64 = vector.load %arg4[%c0_6, %c0_7] : memref<640x256xbf16, #tpu.memory_space<vmem>>, vector<640x256xbf16>
    %cst_8 = arith.constant dense<0.000000e+00> : vector<256x256xf32>
    %65 = tpu.matmul %63, %64, %cst_8 {dimension_numbers = #tpu.dot_dimension_numbers<[1], [0], [0], [1], [0, 0, 1, 1], [], []>} : vector<256x640xbf16>, vector<640x256xbf16>, vector<256x256xf32> -> vector<256x256xf32>
    %66 = vector.extract_strided_slice %65 {offsets = [0, 0], sizes = [128, 256], strides = [1, 1]} : vector<256x256xf32> to vector<128x256xf32>
    %67 = vector.extract_strided_slice %65 {offsets = [128, 0], sizes = [128, 256], strides = [1, 1]} : vector<256x256xf32> to vector<128x256xf32>
    %68 = arith.maximumf %66, %67 : vector<128x256xf32>
    %69 = vector.extract_strided_slice %68 {offsets = [0, 0], sizes = [128, 128], strides = [1, 1]} : vector<128x256xf32> to vector<128x128xf32>
    %70 = vector.extract_strided_slice %68 {offsets = [0, 128], sizes = [128, 128], strides = [1, 1]} : vector<128x256xf32> to vector<128x128xf32>
    %71 = arith.maximumf %69, %70 : vector<128x128xf32>
    %c0_9 = arith.constant 0 : index
    %c0_10 = arith.constant 0 : index
    %72 = vector.load %arg5[%c0_9, %c0_10] : memref<1x128xf32, #tpu.memory_space<vmem>>, vector<1x128xf32>
    %73 = vector.broadcast %72 : vector<1x128xf32> to vector<128x128xf32>
    %74 = arith.addf %71, %73 : vector<128x128xf32>
    %cst_11 = arith.constant 0.000000e+00 : f32
    %75 = vector.broadcast %cst_11 : f32 to vector<128x128xf32>
    %76 = arith.maximumf %74, %75 : vector<128x128xf32>
    %77 = vector.extract_strided_slice %76 {offsets = [0, 0], sizes = [32, 128], strides = [1, 1]} : vector<128x128xf32> to vector<32x128xf32>
    %78 = vector.extract_strided_slice %76 {offsets = [32, 0], sizes = [32, 128], strides = [1, 1]} : vector<128x128xf32> to vector<32x128xf32>
    %79 = vector.extract_strided_slice %76 {offsets = [64, 0], sizes = [32, 128], strides = [1, 1]} : vector<128x128xf32> to vector<32x128xf32>
    %80 = vector.extract_strided_slice %76 {offsets = [96, 0], sizes = [32, 128], strides = [1, 1]} : vector<128x128xf32> to vector<32x128xf32>
    %81 = tpu.concatenate %77, %78, %79, %80 in 1 : vector<32x128xf32>, vector<32x128xf32>, vector<32x128xf32>, vector<32x128xf32> -> vector<32x512xf32>
    %82 = arith.truncf %81 : vector<32x512xf32> to vector<32x512xbf16>
    %c0_12 = arith.constant 0 : index
    %c0_13 = arith.constant 0 : index
    %83 = vector.load %arg6[%c0_12, %c0_13] : memref<512x128xbf16, #tpu.memory_space<vmem>>, vector<512x128xbf16>
    %cst_14 = arith.constant dense<0.000000e+00> : vector<32x128xf32>
    %84 = tpu.matmul %82, %83, %cst_14 {dimension_numbers = #tpu.dot_dimension_numbers<[1], [0], [0], [1], [0, 0, 1, 1], [], []>} : vector<32x512xbf16>, vector<512x128xbf16>, vector<32x128xf32> -> vector<32x128xf32>
    %c0_15 = arith.constant 0 : index
    %c0_16 = arith.constant 0 : index
    %85 = vector.load %arg7[%c0_15, %c0_16] : memref<1x128xf32, #tpu.memory_space<vmem>>, vector<1x128xf32>
    %86 = vector.broadcast %85 : vector<1x128xf32> to vector<32x128xf32>
    %87 = arith.addf %84, %86 : vector<32x128xf32>
    %cst_17 = arith.constant 0.000000e+00 : f32
    %88 = vector.broadcast %cst_17 : f32 to vector<32x128xf32>
    %89 = arith.maximumf %87, %88 : vector<32x128xf32>
    %90 = arith.truncf %89 : vector<32x128xf32> to vector<32x128xbf16>
    %c0_18 = arith.constant 0 : index
    %c0_19 = arith.constant 0 : index
    %91 = vector.load %arg8[%c0_18, %c0_19] : memref<128x128xbf16, #tpu.memory_space<vmem>>, vector<128x128xbf16>
    %cst_20 = arith.constant dense<0.000000e+00> : vector<32x128xf32>
    %92 = tpu.matmul %90, %91, %cst_20 {dimension_numbers = #tpu.dot_dimension_numbers<[1], [0], [0], [1], [0, 0, 1, 1], [], []>} : vector<32x128xbf16>, vector<128x128xbf16>, vector<32x128xf32> -> vector<32x128xf32>
    %c0_21 = arith.constant 0 : index
    %c0_22 = arith.constant 0 : index
    %93 = vector.load %arg9[%c0_21, %c0_22] : memref<1x128xf32, #tpu.memory_space<vmem>>, vector<1x128xf32>
    %94 = vector.broadcast %93 : vector<1x128xf32> to vector<32x128xf32>
    %95 = arith.addf %92, %94 : vector<32x128xf32>
    %cst_23 = arith.constant dense<0xFF800000> : vector<32xf32>
    %96 = vector.multi_reduction <maximumf>, %95, %cst_23 [1] : vector<32x128xf32> to vector<32xf32>
    %97 = vector.shape_cast %96 : vector<32xf32> to vector<32x1xf32>
    %98 = vector.broadcast %97 : vector<32x1xf32> to vector<32x128xf32>
    %99 = arith.subf %95, %98 : vector<32x128xf32>
    %100 = math.exp %99 : vector<32x128xf32>
    %cst_24 = arith.constant dense<0.000000e+00> : vector<32xf32>
    %101 = vector.multi_reduction <add>, %100, %cst_24 [1] : vector<32x128xf32> to vector<32xf32>
    %102 = vector.shape_cast %101 : vector<32xf32> to vector<32x1xf32>
    %103 = tpu.reciprocal %102 {approx = true} : vector<32x1xf32> -> vector<32x1xf32>
    %104 = arith.mulf %102, %103 : vector<32x1xf32>
    %cst_25 = arith.constant 2.000000e+00 : f32
    %105 = vector.broadcast %cst_25 : f32 to vector<32x1xf32>
    %106 = arith.subf %105, %104 : vector<32x1xf32>
    %107 = arith.mulf %103, %106 : vector<32x1xf32>
    %108 = vector.broadcast %107 : vector<32x1xf32> to vector<32x128xf32>
    %109 = arith.mulf %100, %108 : vector<32x128xf32>
    %c0_26 = arith.constant 0 : index
    %c0_27 = arith.constant 0 : index
    %110 = vector.load %arg10[%c0_26, %c0_27] : memref<32x128xf32, #tpu.memory_space<vmem>>, vector<32x128xf32>
    tpu.vector_store %arg10[%c0_26, %c0_27], %109 {strides = array<i32>} : memref<32x128xf32, #tpu.memory_space<vmem>>, vector<32x128xf32>,
    return
  }
  func.func @transform_0(%arg0: i32) -> (i32, i32) {
    %c0_i32 = arith.constant 0 : i32
    %c0_i32_0 = arith.constant 0 : i32
    return %arg0, %c0_i32 : i32, i32
  }
  func.func @transform_1(%arg0: i32) -> (i32, i32) {
    %c0_i32 = arith.constant 0 : i32
    %c0_i32_0 = arith.constant 0 : i32
    %c0_i32_1 = arith.constant 0 : i32
    return %c0_i32, %c0_i32_0 : i32, i32
  }
  func.func @transform_2(%arg0: i32) -> (i32, i32) {
    %c0_i32 = arith.constant 0 : i32
    %c0_i32_0 = arith.constant 0 : i32
    %c0_i32_1 = arith.constant 0 : i32
    return %c0_i32, %c0_i32_0 : i32, i32
  }
  func.func @transform_3(%arg0: i32) -> (i32, i32) {
    %c0_i32 = arith.constant 0 : i32
    %c0_i32_0 = arith.constant 0 : i32
    %c0_i32_1 = arith.constant 0 : i32
    return %c0_i32, %c0_i32_0 : i32, i32
  }
  func.func @transform_4(%arg0: i32) -> (i32, i32) {
    %c0_i32 = arith.constant 0 : i32
    %c0_i32_0 = arith.constant 0 : i32
    %c0_i32_1 = arith.constant 0 : i32
    return %c0_i32, %c0_i32_0 : i32, i32
  }
  func.func @transform_5(%arg0: i32) -> (i32, i32) {
    %c0_i32 = arith.constant 0 : i32
    %c0_i32_0 = arith.constant 0 : i32
    %c0_i32_1 = arith.constant 0 : i32
    return %c0_i32, %c0_i32_0 : i32, i32
  }
  func.func @transform_6(%arg0: i32) -> (i32, i32) {
    %c0_i32 = arith.constant 0 : i32
    %c0_i32_0 = arith.constant 0 : i32
    %c0_i32_1 = arith.constant 0 : i32
    return %c0_i32, %c0_i32_0 : i32, i32
  }
  func.func @transform_7(%arg0: i32) -> (i32, i32) {
    %c0_i32 = arith.constant 0 : i32
    %c0_i32_0 = arith.constant 0 : i32
    %c0_i32_1 = arith.constant 0 : i32
    return %c0_i32, %c0_i32_0 : i32, i32
  }
  func.func @transform_8(%arg0: i32) -> (i32, i32) {
    %c0_i32 = arith.constant 0 : i32
    %c0_i32_0 = arith.constant 0 : i32
    %c0_i32_1 = arith.constant 0 : i32
    return %c0_i32, %c0_i32_0 : i32, i32
  }
  func.func @transform_9(%arg0: i32) -> (i32, i32) {
    %c0_i32 = arith.constant 0 : i32
    %c0_i32_0 = arith.constant 0 : i32
    return %arg0, %c0_i32 : i32, i32
  }
}

</mosaic_0001>

<bundles_post_ra>
// kernel: net_forward.1
= control target key start
LH: loop header
LB: loop body
LE: loop exit
PB: predicated region body
PF: predicated region fallthrough
CT: control target
= control target key end

     0   :  { %vm667_vm0 = vcmask 97280   ;;  %vm812_vm1 = vcmask 1045504   ;;  %s5523_s1 = inlined_call_operand.vmem [shape: bf16[140,256], index: 1, kind: input, shape index: {}]   ;;  %s5524_s0 = inlined_call_operand.vmem [shape: bf16[768,140], index: 0, kind: input, shape index: {}]   ;;  %s5525_s3 = inlined_call_operand.vmem [shape: bf16[640,256], index: 3, kind: input, shape index: {}]   ;;  %s5526_s2 = inlined_call_operand.vmem [shape: f32[1,128], index: 2, kind: input, shape index: {}]   ;;  %s5527_s5 = inlined_call_operand.vmem [shape: bf16[512,128], index: 5, kind: input, shape index: {}]   ;;  %s5528_s4 = inlined_call_operand.vmem [shape: f32[1,128], index: 4, kind: input, shape index: {}]   ;;  %s5529_s7 = inlined_call_operand.vmem [shape: bf16[128,128], index: 7, kind: input, shape index: {}]   ;;  %s5530_s6 = inlined_call_operand.vmem [shape: f32[1,128], index: 6, kind: input, shape index: {}]   ;;  %s5531_s8 = inlined_call_operand.vmem [shape: f32[1,128], index: 8, kind: input, shape index: {}]   ;;  %s5532_s9 = inlined_call_operand.vmem [shape: f32[32,128], index: 9, kind: output, shape index: {}]  }
   0x1   :  { %v3802_v0 = vld [vmem:[%s5523_s1 + $0x4] ss:$8 sps:$4 sm:$0xff]   ;;  %v3804_v1 = vld [vmem:[%s5523_s1] ss:$8 sps:$4 sm:$0xff]   ;;  %v3805_v2 = vld [vmem:[%s5523_s1 + $0x14] ss:$8 sps:$4 sm:$0xff]  }
   0x2   :  { %819 = vmatprep.subr.bf16.mxu0 %v3802_v0  ;;  %v3807_v3 = vld [vmem:[%s5523_s1 + $0x10] ss:$8 sps:$4 sm:$0xff]   ;;  %v3808_v4 = vld [vmem:[%s5523_s1 + $0x24] ss:$8 sps:$4 sm:$0xff]   ;;  %v3810_v5 = vld [vmem:[%s5523_s1 + $0x20] ss:$8 sps:$4 sm:$0xff]  }
   0x3   :  { %820 = vmatpush1.bf16.msra.mxu0 %v3804_v1  ;;  %v3811_v6 = vld [vmem:[%s5523_s1 + $0x34] ss:$8 sps:$4 sm:$0xff]   ;;  %v3813_v7 = vld [vmem:[%s5523_s1 + $0x30] ss:$8 sps:$4 sm:$0xff]   ;;  %v3814_v8 = vld [vmem:[%s5523_s1 + $0x44] ss:$8 sps:$4 sm:$0xff]  }
   0x4   :  { %821 = vmatprep.subr.bf16.mxu0 %v3805_v2  ;;  %v3831_v9 = vld [vmem:[%s5524_s0 + $0x4] ss:$8 sps:$4 sm:$0xff]   ;;  %v3816_v10 = vld [vmem:[%s5523_s1 + $0x40] ss:$8 sps:$4 sm:$0xff]   ;;  %v3817_v11 = vld [vmem:[%s5523_s1 + $0x54] ss:$8 sps:$4 sm:$0xff]  }
   0x5   :  { %3415 = vmatprep.mubr.msk.bf16.mxu0 %vm667_vm0, %v3831_v9  ;;  %v3819_v12 = vld [vmem:[%s5523_s1 + $0x50] ss:$8 sps:$4 sm:$0xff]   ;;  %v3820_v13 = vld [vmem:[%s5523_s1 + $0x64] ss:$8 sps:$4 sm:$0xff]   ;;  %v3822_v14 = vld [vmem:[%s5523_s1 + $0x60] ss:$8 sps:$4 sm:$0xff]  }
   0x6   :  { %v3823_v15 = vld [vmem:[%s5523_s1 + $0x74] ss:$8 sps:$4 sm:$0xff]   ;;  %v3825_v16 = vld [vmem:[%s5523_s1 + $0x70] ss:$8 sps:$4 sm:$0xff]   ;;  %v3829_v20 = vld [vmem:[%s5524_s0] ss:$8 sps:$4 sm:$0xff]  }
   0x7   :  { %822 = vmatpush1.bf16.msra.mxu0 %v3807_v3  ;;  %v3826_v17 = vld [vmem:[%s5523_s1 + $0x84] ss:$8 sps:$4 sm:$0x3f]   ;;  %v3828_v18 = vld [vmem:[%s5523_s1 + $0x80] ss:$8 sps:$4 sm:$0x3f]  }
   0x8   :  { %823 = vmatprep.subr.bf16.mxu0 %v3808_v4  ;;  %v814_v19 = vsel %vm812_vm1, %v3828_v18, 0  ;;  %v3832_v21 = vld [vmem:[%s5524_s0 + $0x14] ss:$8 sps:$4 sm:$0xff]   ;;  %v3834_v22 = vld [vmem:[%s5524_s0 + $0x10] ss:$8 sps:$4 sm:$0xff]  }
   0x9   :  { %v3835_v23 = vld [vmem:[%s5524_s0 + $0x24] ss:$8 sps:$4 sm:$0xff]   ;;  %v3837_v24 = vld [vmem:[%s5524_s0 + $0x20] ss:$8 sps:$4 sm:$0xff]   ;;  %v3838_v25 = vld [vmem:[%s5524_s0 + $0x34] ss:$8 sps:$4 sm:$0xff]  }
   0xa   :  { %v3840_v26 = vld [vmem:[%s5524_s0 + $0x30] ss:$8 sps:$4 sm:$0xff]   ;;  %v3841_v27 = vld [vmem:[%s5524_s0 + $0x44] ss:$8 sps:$4 sm:$0xff]   ;;  %v3843_v28 = vld [vmem:[%s5524_s0 + $0x40] ss:$8 sps:$4 sm:$0xff]  }
   0xb   :  { %824 = vmatpush1.bf16.msra.mxu0 %v3810_v5  ;;  %v3844_v29 = vld [vmem:[%s5524_s0 + $0x54] ss:$8 sps:$4 sm:$0xff]   ;;  %v3846_v30 = vld [vmem:[%s5524_s0 + $0x50] ss:$8 sps:$4 sm:$0xff]   ;;  %v3847_v31 = vld [vmem:[%s5524_s0 + $0x64] ss:$8 sps:$4 sm:$0xff]  }
   0xc   :  { %825 = vmatprep.subr.bf16.mxu0 %v3811_v6  ;;  %v3849_v32 = vld [vmem:[%s5524_s0 + $0x60] ss:$8 sps:$4 sm:$0xff]   ;;  %v3850_v33 = vld [vmem:[%s5524_s0 + $0x74] ss:$8 sps:$4 sm:$0xff]   ;;  %v3852_v34 = vld [vmem:[%s5524_s0 + $0x70] ss:$8 sps:$4 sm:$0xff]  }
   0xd   :  { %v3853_v35 = vld [vmem:[%s5524_s0 + $0x84] ss:$8 sps:$4 sm:$0xff]   ;;  %v3855_v36 = vld [vmem:[%s5524_s0 + $0x80] ss:$8 sps:$4 sm:$0xff]   ;;  %v3856_v37 = vld [vmem:[%s5524_s0 + $0x94] ss:$8 sps:$4 sm:$0xff]  }
   0xe   :  { %v3858_v38 = vld [vmem:[%s5524_s0 + $0x90] ss:$8 sps:$4 sm:$0xff]   ;;  %v3859_v39 = vld [vmem:[%s5524_s0 + $0xa4] ss:$8 sps:$4 sm:$0xff]   ;;  %v3861_v40 = vld [vmem:[%s5524_s0 + $0xa0] ss:$8 sps:$4 sm:$0xff]  }
   0xf   :  { %826 = vmatpush1.bf16.msra.mxu0 %v3813_v7  ;;  %v3862_v41 = vld [vmem:[%s5524_s0 + $0xb4] ss:$8 sps:$4 sm:$0xff]   ;;  %v3864_v42 = vld [vmem:[%s5524_s0 + $0xb0] ss:$8 sps:$4 sm:$0xff]   ;;  %v3865_v43 = vld [vmem:[%s5524_s0 + $0xc4] ss:$8 sps:$4 sm:$0xff]  }
  0x10   :  { %827 = vmatprep.subr.bf16.mxu0 %v3814_v8  ;;  %v3867_v44 = vld [vmem:[%s5524_s0 + $0xc0] ss:$8 sps:$4 sm:$0xff]   ;;  %v3868_v45 = vld [vmem:[%s5524_s0 + $0xd4] ss:$8 sps:$4 sm:$0xff]   ;;  %v3870_v46 = vld [vmem:[%s5524_s0 + $0xd0] ss:$8 sps:$4 sm:$0xff]  }
  0x11   :  { %v3871_v47 = vld [vmem:[%s5524_s0 + $0xe4] ss:$8 sps:$4 sm:$0xff]   ;;  %v3873_v48 = vld [vmem:[%s5524_s0 + $0xe0] ss:$8 sps:$4 sm:$0xff]   ;;  %v3874_v49 = vld [vmem:[%s5524_s0 + $0xf4] ss:$8 sps:$4 sm:$0xff]  }
  0x12   :  { %v3876_v50 = vld [vmem:[%s5524_s0 + $0xf0] ss:$8 sps:$4 sm:$0xff]   ;;  %v3877_v51 = vld [vmem:[%s5524_s0 + $0x104] ss:$8 sps:$4 sm:$0xff]   ;;  %v3879_v52 = vld [vmem:[%s5524_s0 + $0x100] ss:$8 sps:$4 sm:$0xff]  }
  0x13   :  { %828 = vmatpush1.bf16.msra.mxu0 %v3816_v10  ;;  %v3880_v53 = vld [vmem:[%s5524_s0 + $0x114] ss:$8 sps:$4 sm:$0xff]   ;;  %v3882_v54 = vld [vmem:[%s5524_s0 + $0x110] ss:$8 sps:$4 sm:$0xff]   ;;  %v3883_v55 = vld [vmem:[%s5524_s0 + $0x124] ss:$8 sps:$4 sm:$0xff]  }
  0x14   :  { %829 = vmatprep.subr.bf16.mxu0 %v3817_v11  ;;  %v3885_v56 = vld [vmem:[%s5524_s0 + $0x120] ss:$8 sps:$4 sm:$0xff]   ;;  %v3886_v57 = vld [vmem:[%s5524_s0 + $0x134] ss:$8 sps:$4 sm:$0xff]   ;;  %v3888_v58 = vld [vmem:[%s5524_s0 + $0x130] ss:$8 sps:$4 sm:$0xff]  }
  0x15   :  { %v3889_v59 = vld [vmem:[%s5524_s0 + $0x144] ss:$8 sps:$4 sm:$0xff]   ;;  %v3891_v60 = vld [vmem:[%s5524_s0 + $0x140] ss:$8 sps:$4 sm:$0xff]   ;;  %v3892_v61 = vld [vmem:[%s5524_s0 + $0x154] ss:$8 sps:$4 sm:$0xff]  }
  0x16   :  { %v3894_v62 = vld [vmem:[%s5524_s0 + $0x150] ss:$8 sps:$4 sm:$0xff]   ;;  %v3895_v63 = vld [vmem:[%s5524_s0 + $0x164] ss:$8 sps:$4 sm:$0xff]   ;;  %v3897_v0 = vld [vmem:[%s5524_s0 + $0x160] ss:$8 sps:$4 sm:$0xff]  }
  0x17   :  { %830 = vmatpush1.bf16.msra.mxu0 %v3819_v12  ;;  %v3898_v1 = vld [vmem:[%s5524_s0 + $0x174] ss:$8 sps:$4 sm:$0xff]   ;;  %v3900_v2 = vld [vmem:[%s5524_s0 + $0x170] ss:$8 sps:$4 sm:$0xff]   ;;  %v3901_v3 = vld [vmem:[%s5524_s0 + $0x184] ss:$8 sps:$4 sm:$0xff]  }
  0x18   :  { %831 = vmatprep.subr.bf16.mxu0 %v3820_v13  ;;  %v3903_v4 = vld [vmem:[%s5524_s0 + $0x180] ss:$8 sps:$4 sm:$0xff]   ;;  %v3904_v5 = vld [vmem:[%s5524_s0 + $0x194] ss:$8 sps:$4 sm:$0xff]   ;;  %v3906_v6 = vld [vmem:[%s5524_s0 + $0x190] ss:$8 sps:$4 sm:$0xff]  }
  0x19   :  { %v3907_v7 = vld [vmem:[%s5524_s0 + $0x1a4] ss:$8 sps:$4 sm:$0xff]   ;;  %v3909_v8 = vld [vmem:[%s5524_s0 + $0x1a0] ss:$8 sps:$4 sm:$0xff]   ;;  %v3910_v9 = vld [vmem:[%s5524_s0 + $0x1b4] ss:$8 sps:$4 sm:$0xff]  }
  0x1a   :  { %v3912_v12 = vld [vmem:[%s5524_s0 + $0x1b0] ss:$8 sps:$4 sm:$0xff]   ;;  %v3915_v18 = vld [vmem:[%s5524_s0 + $0x1c0] ss:$8 sps:$4 sm:$0xff]  }
  0x1b   :  { %832 = vmatpush1.bf16.msra.mxu0 %v3822_v14  ;;  %v3913_v14 = vld [vmem:[%s5524_s0 + $0x1c4] ss:$8 sps:$4 sm:$0xff]  }
  0x1c   :  { %833 = vmatprep.subr.bf16.mxu0 %v3823_v15 }
  0x1f   :  { %834 = vmatpush1.bf16.msra.mxu0 %v3825_v16 }
  0x20   :  { %3414 = vmatprep.subr.msk.bf16.mxu0 %vm812_vm1, %v3826_v17 }
  0x23   :  { %836 = vmatpush1.bf16.msra.mxu0 %v814_v19 }
  0x26   :  { %852 = vmatmul.mubr.bf16.vlgmr.msra.gmra.mrb[0].mxu0 %v3829_v20  ;;  %v3916_v20 = vld [vmem:[%s5524_s0 + $0x1d4] ss:$8 sps:$4 sm:$0xff]  }
  0x27   :  { %3416 = vmatprep.mubr.msk.bf16.mxu0 %vm667_vm0, %v3832_v21 }
  0x2e   :  { %862 = vmatmul.mubr.bf16.gmra.mrb[4].mxu0 %v3834_v22 }
  0x2f   :  { %3417 = vmatprep.mubr.msk.bf16.mxu0 %vm667_vm0, %v3835_v23 }
  0x36   :  { %872 = vmatmul.mubr.bf16.gmra.mrb[8].mxu0 %v3837_v24  ;;  %v3918_v24 = vld [vmem:[%s5524_s0 + $0x1d0] ss:$8 sps:$4 sm:$0xff]  }
  0x37   :  { %3418 = vmatprep.mubr.msk.bf16.mxu0 %vm667_vm0, %v3838_v25 }
  0x3e   :  { %882 = vmatmul.mubr.bf16.gmra.mrb[12].mxu0 %v3840_v26  ;;  %v3919_v26 = vld [vmem:[%s5524_s0 + $0x1e4] ss:$8 sps:$4 sm:$0xff]  }
  0x3f   :  { %3419 = vmatprep.mubr.msk.bf16.mxu0 %vm667_vm0, %v3841_v27 }
  0x46   :  { %892 = vmatmul.mubr.bf16.gmra.mrb[16].mxu0 %v3843_v28 }
  0x47   :  { %3420 = vmatprep.mubr.msk.bf16.mxu0 %vm667_vm0, %v3844_v29 }
  0x4e   :  { %902 = vmatmul.mubr.bf16.gmra.mrb[20].mxu0 %v3846_v30  ;;  %v3921_v30 = vld [vmem:[%s5524_s0 + $0x1e0] ss:$8 sps:$4 sm:$0xff]  }
  0x4f   :  { %3421 = vmatprep.mubr.msk.bf16.mxu0 %vm667_vm0, %v3847_v31 }
  0x56   :  { %912 = vmatmul.mubr.bf16.gmra.mrb[24].mxu0 %v3849_v32  ;;  %v3922_v32 = vld [vmem:[%s5524_s0 + $0x1f4] ss:$8 sps:$4 sm:$0xff]  }
  0x57   :  { %3422 = vmatprep.mubr.msk.bf16.mxu0 %vm667_vm0, %v3850_v33 }
  0x5e   :  { %922 = vmatmul.mubr.bf16.gmra.mrb[28].mxu0 %v3852_v34  ;;  %v3970_v34 = vld [vmem:[%s5525_s3 + $0x4] ss:$8 sps:$4 sm:$0xff]  }
  0x5f   :  { %3423 = vmatprep.mubr.msk.bf16.mxu0 %vm667_vm0, %v3853_v35  ;;  %v3972_v35 = vld [vmem:[%s5525_s3] ss:$8 sps:$4 sm:$0xff]   ;;  %2083 = vmatprep.subr.bf16.mxu1 %v3970_v34  ;;  %v4002_v34 = vld [vmem:[%s5525_s3 + $0x90] ss:$8 sps:$4 sm:$0xff]  }
  0x60   :  { %2084 = vmatpush1.bf16.msra.mxu1 %v3972_v35 }
  0x66   :  { %932 = vmatmul.mubr.bf16.gmra.mrb[32].mxu0 %v3855_v36  ;;  %v3924_v36 = vld [vmem:[%s5524_s0 + $0x1f0] ss:$8 sps:$4 sm:$0xff]  }
  0x67   :  { %3424 = vmatprep.mubr.msk.bf16.mxu0 %vm667_vm0, %v3856_v37 }
  0x6e   :  { %942 = vmatmul.mubr.bf16.gmra.mrb[36].mxu0 %v3858_v38 }
  0x6f   :  { %3425 = vmatprep.mubr.msk.bf16.mxu0 %vm667_vm0, %v3859_v39  ;;  %v3973_v39 = vld [vmem:[%s5525_s3 + $0x14] ss:$8 sps:$4 sm:$0xff]  }
  0x70   :  { %2085 = vmatprep.subr.bf16.mxu1 %v3973_v39  ;;  %v4005_v39 = vld [vmem:[%s5525_s3 + $0xa0] ss:$8 sps:$4 sm:$0xff]  }
  0x76   :  { %952 = vmatmul.mubr.bf16.gmra.mrb[40].mxu0 %v3861_v40 }
  0x77   :  { %3426 = vmatprep.mubr.msk.bf16.mxu0 %vm667_vm0, %v3862_v41  ;;  %v3925_v41 = vld [vmem:[%s5524_s0 + $0x204] ss:$8 sps:$4 sm:$0xff]  }
  0x7e   :  { %962 = vmatmul.mubr.bf16.gmra.mrb[44].mxu0 %v3864_v42  ;;  %v3977_v42 = vld [vmem:[%s5525_s3 + $0x10] ss:$8 sps:$4 sm:$0xff]  }
  0x7f   :  { %3427 = vmatprep.mubr.msk.bf16.mxu0 %vm667_vm0, %v3865_v43  ;;  %2086 = vmatpush1.bf16.msra.mxu1 %v3977_v42 }
  0x86   :  { %972 = vmatmul.mubr.bf16.gmra.mrb[48].mxu0 %v3867_v44  ;;  %v3979_v44 = vld [vmem:[%s5525_s3 + $0x24] ss:$8 sps:$4 sm:$0xff]  }
  0x87   :  { %3428 = vmatprep.mubr.msk.bf16.mxu0 %vm667_vm0, %v3868_v45  ;;  %v3981_v45 = vld [vmem:[%s5525_s3 + $0x20] ss:$8 sps:$4 sm:$0xff]   ;;  %2087 = vmatprep.subr.bf16.mxu1 %v3979_v44 }
  0x88   :  { %2088 = vmatpush1.bf16.msra.mxu1 %v3981_v45  ;;  %v3939_v44 = vld [vmem:[%s5524_s0 + $0x240] ss:$8 sps:$4 sm:$0xff]   ;;  %v4006_v45 = vld [vmem:[%s5525_s3 + $0xb4] ss:$8 sps:$4 sm:$0xff]  }
  0x8e   :  { %982 = vmatmul.mubr.bf16.gmra.mrb[52].mxu0 %v3870_v46  ;;  %v3927_v46 = vld [vmem:[%s5524_s0 + $0x200] ss:$8 sps:$4 sm:$0xff]  }
  0x8f   :  { %3429 = vmatprep.mubr.msk.bf16.mxu0 %vm667_vm0, %v3871_v47 }
  0x96   :  { %992 = vmatmul.mubr.bf16.gmra.mrb[56].mxu0 %v3873_v48  ;;  %v3928_v48 = vld [vmem:[%s5524_s0 + $0x214] ss:$8 sps:$4 sm:$0xff]  }
  0x97   :  { %3430 = vmatprep.mubr.msk.bf16.mxu0 %vm667_vm0, %v3874_v49 }
  0x9e   :  { %1002 = vmatmul.mubr.bf16.gmra.mrb[60].mxu0 %v3876_v50  ;;  %v3982_v50 = vld [vmem:[%s5525_s3 + $0x34] ss:$8 sps:$4 sm:$0xff]  }
  0x9f   :  { %3431 = vmatprep.mubr.msk.bf16.mxu0 %vm667_vm0, %v3877_v51  ;;  %2089 = vmatprep.subr.bf16.mxu1 %v3982_v50  ;;  %v4008_v50 = vld [vmem:[%s5525_s3 + $0xb0] ss:$8 sps:$4 sm:$0xff]  }
  0xa6   :  { %1012 = vmatmul.mubr.bf16.gmra.mrb[64].mxu0 %v3879_v52  ;;  %v3984_v52 = vld [vmem:[%s5525_s3 + $0x30] ss:$8 sps:$4 sm:$0xff]  }
  0xa7   :  { %3432 = vmatprep.mubr.msk.bf16.mxu0 %vm667_vm0, %v3880_v53  ;;  %2090 = vmatpush1.bf16.msra.mxu1 %v3984_v52 }
  0xae   :  { %1022 = vmatmul.mubr.bf16.gmra.mrb[68].mxu0 %v3882_v54  ;;  %v3985_v54 = vld [vmem:[%s5525_s3 + $0x44] ss:$8 sps:$4 sm:$0xff]  }
  0xaf   :  { %3433 = vmatprep.mubr.msk.bf16.mxu0 %vm667_vm0, %v3883_v55  ;;  %2091 = vmatprep.subr.bf16.mxu1 %v3985_v54  ;;  %v3987_v55 = vld [vmem:[%s5525_s3 + $0x40] ss:$8 sps:$4 sm:$0xff]   ;;  %v4009_v54 = vld [vmem:[%s5525_s3 + $0xc4] ss:$8 sps:$4 sm:$0xff]  }
  0xb0   :  { %2092 = vmatpush1.bf16.msra.mxu1 %v3987_v55  ;;  %v4011_v55 = vld [vmem:[%s5525_s3 + $0xc0] ss:$8 sps:$4 sm:$0xff]  }
  0xb6   :  { %1032 = vmatmul.mubr.bf16.gmra.mrb[72].mxu0 %v3885_v56  ;;  %v3930_v56 = vld [vmem:[%s5524_s0 + $0x210] ss:$8 sps:$4 sm:$0xff]  }
  0xb7   :  { %3434 = vmatprep.mubr.msk.bf16.mxu0 %vm667_vm0, %v3886_v57 }
  0xbe   :  { %1042 = vmatmul.mubr.bf16.gmra.mrb[76].mxu0 %v3888_v58  ;;  %v3931_v58 = vld [vmem:[%s5524_s0 + $0x224] ss:$8 sps:$4 sm:$0xff]  }
  0xbf   :  { %3435 = vmatprep.mubr.msk.bf16.mxu0 %vm667_vm0, %v3889_v59 }
  0xc6   :  { %1052 = vmatmul.mubr.bf16.gmra.mrb[80].mxu0 %v3891_v60  ;;  %v3988_v60 = vld [vmem:[%s5525_s3 + $0x54] ss:$8 sps:$4 sm:$0xff]  }
  0xc7   :  { %3436 = vmatprep.mubr.msk.bf16.mxu0 %vm667_vm0, %v3892_v61  ;;  %2093 = vmatprep.subr.bf16.mxu1 %v3988_v60  ;;  %v3942_v60 = vld [vmem:[%s5524_s0 + $0x250] ss:$8 sps:$4 sm:$0xff]  }
  0xce   :  { %1062 = vmatmul.mubr.bf16.gmra.mrb[84].mxu0 %v3894_v62  ;;  %v3990_v62 = vld [vmem:[%s5525_s3 + $0x50] ss:$8 sps:$4 sm:$0xff]  }
  0xcf   :  { %3437 = vmatprep.mubr.msk.bf16.mxu0 %vm667_vm0, %v3895_v63  ;;  %2094 = vmatpush1.bf16.msra.mxu1 %v3990_v62  ;;  %v4012_v62 = vld [vmem:[%s5525_s3 + $0xd4] ss:$8 sps:$4 sm:$0xff]  }
  0xd6   :  { %1072 = vmatmul.mubr.bf16.gmra.mrb[88].mxu0 %v3897_v0  ;;  %v3991_v0 = vld [vmem:[%s5525_s3 + $0x64] ss:$8 sps:$4 sm:$0xff]  }
  0xd7   :  { %3438 = vmatprep.mubr.msk.bf16.mxu0 %vm667_vm0, %v3898_v1  ;;  %2095 = vmatprep.subr.bf16.mxu1 %v3991_v0  ;;  %v3993_v1 = vld [vmem:[%s5525_s3 + $0x60] ss:$8 sps:$4 sm:$0xff]  }
  0xd8   :  { %2096 = vmatpush1.bf16.msra.mxu1 %v3993_v1  ;;  %v3943_v1 = vld [vmem:[%s5524_s0 + $0x264] ss:$8 sps:$4 sm:$0xff]  }
  0xde   :  { %1082 = vmatmul.mubr.bf16.gmra.mrb[92].mxu0 %v3900_v2  ;;  %v3933_v2 = vld [vmem:[%s5524_s0 + $0x220] ss:$8 sps:$4 sm:$0xff]  }
  0xdf   :  { %3439 = vmatprep.mubr.msk.bf16.mxu0 %vm667_vm0, %v3901_v3 }
  0xe6   :  { %1092 = vmatmul.mubr.bf16.gmra.mrb[96].mxu0 %v3903_v4  ;;  %v3934_v4 = vld [vmem:[%s5524_s0 + $0x234] ss:$8 sps:$4 sm:$0xff]  }
  0xe7   :  { %3440 = vmatprep.mubr.msk.bf16.mxu0 %vm667_vm0, %v3904_v5 }
  0xee   :  { %1102 = vmatmul.mubr.bf16.gmra.mrb[100].mxu0 %v3906_v6  ;;  %v3994_v6 = vld [vmem:[%s5525_s3 + $0x74] ss:$8 sps:$4 sm:$0xff]  }
  0xef   :  { %3441 = vmatprep.mubr.msk.bf16.mxu0 %vm667_vm0, %v3907_v7  ;;  %2097 = vmatprep.subr.bf16.mxu1 %v3994_v6  ;;  %v4015_v6 = vld [vmem:[%s5525_s3 + $0xe4] ss:$8 sps:$4 sm:$0xff]  }
  0xf6   :  { %1112 = vmatmul.mubr.bf16.gmra.mrb[104].mxu0 %v3909_v8  ;;  %v3996_v8 = vld [vmem:[%s5525_s3 + $0x70] ss:$8 sps:$4 sm:$0xff]  }
  0xf7   :  { %3442 = vmatprep.mubr.msk.bf16.mxu0 %vm667_vm0, %v3910_v9  ;;  %2098 = vmatpush1.bf16.msra.mxu1 %v3996_v8  ;;  %v4017_v8 = vld [vmem:[%s5525_s3 + $0xe0] ss:$8 sps:$4 sm:$0xff]  }
  0xf9   :  { %v4448_v10 = vpop.f32.mrb[0].mxu0 }
  0xfa   :  { %v4450_v11 = vpop.f32.mrb[1].mxu0 }
  0xfb   :  { %v4455_v13 = vpop.f32.mrb[2].mxu0 }
  0xfc   :  { %v4460_v15 = vpop.f32.mrb[3].mxu0 }
  0xfe   :  { %1122 = vmatmul.mubr.bf16.gmra.mrb[108].mxu0 %v3912_v12  ;;  %v3997_v12 = vld [vmem:[%s5525_s3 + $0x84] ss:$8 sps:$4 sm:$0xff]  }
  0xff   :  { %3443 = vmatprep.mubr.msk.bf16.mxu0 %vm667_vm0, %v3913_v14  ;;  %2099 = vmatprep.subr.bf16.mxu1 %v3997_v12  ;;  %v3999_v14 = vld [vmem:[%s5525_s3 + $0x80] ss:$8 sps:$4 sm:$0xff]  }
 0x100   :  { %2100 = vmatpush1.bf16.msra.mxu1 %v3999_v14 }
 0x101   :  { %v4463_v16 = vpop.f32.mrb[4].mxu0 }
 0x102   :  { %v4465_v17 = vpop.f32.mrb[5].mxu0 }
 0x103   :  { %v4470_v19 = vpop.f32.mrb[6].mxu0 }
 0x104   :  { %v4475_v21 = vpop.f32.mrb[7].mxu0 }
 0x106   :  { %1132 = vmatmul.mubr.bf16.gmra.mrb[112].mxu0 %v3915_v18 }
 0x107   :  { %3444 = vmatprep.mubr.msk.bf16.mxu0 %vm667_vm0, %v3916_v20 }
 0x109   :  { %v4478_v22 = vpop.f32.mrb[8].mxu0 }
 0x10a   :  { %v4480_v23 = vpop.f32.mrb[9].mxu0 }
 0x10b   :  { %v4485_v25 = vpop.f32.mrb[10].mxu0 }
 0x10c   :  { %v4490_v27 = vpop.f32.mrb[11].mxu0 }
 0x10e   :  { %1142 = vmatmul.mubr.bf16.gmra.mrb[116].mxu0 %v3918_v24  ;;  %v3936_v24 = vld [vmem:[%s5524_s0 + $0x230] ss:$8 sps:$4 sm:$0xff]  }
 0x10f   :  { %3445 = vmatprep.mubr.msk.bf16.mxu0 %vm667_vm0, %v3919_v26  ;;  %v4000_v26 = vld [vmem:[%s5525_s3 + $0x94] ss:$8 sps:$4 sm:$0xff]  }
 0x110   :  { %2101 = vmatprep.subr.bf16.mxu1 %v4000_v26  ;;  %v4018_v26 = vld [vmem:[%s5525_s3 + $0xf4] ss:$8 sps:$4 sm:$0xff]  }
 0x111   :  { %v4493_v28 = vpop.f32.mrb[12].mxu0  ;;  %2102 = vmatpush1.bf16.msra.mxu1 %v4002_v34  ;;  %v3946_v34 = vld [vmem:[%s5524_s0 + $0x274] ss:$8 sps:$4 sm:$0xff]  }
 0x112   :  { %v4495_v29 = vpop.f32.mrb[13].mxu0 }
 0x113   :  { %v4500_v31 = vpop.f32.mrb[14].mxu0 }
 0x114   :  { %v4505_v33 = vpop.f32.mrb[15].mxu0 }
 0x116   :  { %1152 = vmatmul.mubr.bf16.gmra.mrb[120].mxu0 %v3921_v30 }
 0x117   :  { %3446 = vmatprep.mubr.msk.bf16.mxu0 %vm667_vm0, %v3922_v32  ;;  %v3937_v32 = vld [vmem:[%s5524_s0 + $0x244] ss:$8 sps:$4 sm:$0xff]  }
 0x119   :  { %v4517_v37 = vpop.f32.mrb[16].mxu0 }
 0x11a   :  { %v4519_v38 = vpop.f32.mrb[17].mxu0 }
 0x11b   :  { %v4524_v40 = vpop.f32.mrb[18].mxu0 }
 0x11c   :  { %v4532_v43 = vpop.f32.mrb[19].mxu0 }
 0x11e   :  { %1162 = vmatmul.mubr.bf16.gmra.mrb[124].mxu0 %v3924_v36  ;;  %v4003_v36 = vld [vmem:[%s5525_s3 + $0xa4] ss:$8 sps:$4 sm:$0xff]  }
 0x11f   :  { %3447 = vmatprep.mubr.msk.bf16.mxu0 %vm667_vm0, %v3925_v41  ;;  %2103 = vmatprep.subr.bf16.mxu1 %v4003_v36  ;;  %v4020_v36 = vld [vmem:[%s5525_s3 + $0xf0] ss:$8 sps:$4 sm:$0xff]  }
 0x120   :  { %2104 = vmatpush1.bf16.msra.mxu1 %v4005_v39 }
 0x121   :  { %v4544_v47 = vpop.f32.mrb[20].mxu0  ;;  %2105 = vmatprep.subr.bf16.mxu1 %v4006_v45 }
 0x122   :  { %v4549_v49 = vpop.f32.mrb[21].mxu0 }
 0x123   :  { %v4554_v51 = vpop.f32.mrb[22].mxu0 }
 0x124   :  { %v4559_v53 = vpop.f32.mrb[23].mxu0  ;;  %2106 = vmatpush1.bf16.msra.mxu1 %v4008_v50 }
 0x125   :  { %2107 = vmatprep.subr.bf16.mxu1 %v4009_v54  ;;  %v3949_v54 = vld [vmem:[%s5524_s0 + $0x284] ss:$8 sps:$4 sm:$0xff]  }
 0x126   :  { %1172 = vmatmul.mubr.bf16.gmra.mrb[128].mxu0 %v3927_v46 }
 0x127   :  { %3448 = vmatprep.mubr.msk.bf16.mxu0 %vm667_vm0, %v3928_v48  ;;  %v3940_v48 = vld [vmem:[%s5524_s0 + $0x254] ss:$8 sps:$4 sm:$0xff]  }
 0x128   :  { %2108 = vmatpush1.bf16.msra.mxu1 %v4011_v55 }
 0x129   :  { %v4571_v57 = vpop.f32.mrb[24].mxu0  ;;  %2109 = vmatprep.subr.bf16.mxu1 %v4012_v62 }
 0x12a   :  { %v4576_v59 = vpop.f32.mrb[25].mxu0 }
 0x12b   :  { %v4581_v61 = vpop.f32.mrb[26].mxu0 }
 0x12c   :  { %v4586_v63 = vpop.f32.mrb[27].mxu0 }
 0x12e   :  { %1182 = vmatmul.mubr.bf16.gmra.mrb[132].mxu0 %v3930_v56 }
 0x12f   :  { %3449 = vmatprep.mubr.msk.bf16.mxu0 %vm667_vm0, %v3931_v58 }
 0x131   :  { %v4598_v3 = vpop.f32.mrb[28].mxu0 }
 0x132   :  { %v4603_v5 = vpop.f32.mrb[29].mxu0 }
 0x133   :  { %v4608_v7 = vpop.f32.mrb[30].mxu0 }
 0x134   :  { %v4613_v9 = vpop.f32.mrb[31].mxu0 }
 0x136   :  { %1192 = vmatmul.mubr.bf16.gmra.mrb[136].mxu0 %v3933_v2  ;;  %v4014_v2 = vld [vmem:[%s5525_s3 + $0xd0] ss:$8 sps:$4 sm:$0xff]  }
 0x137   :  { %3450 = vmatprep.mubr.msk.bf16.mxu0 %vm667_vm0, %v3934_v4  ;;  %2110 = vmatpush1.bf16.msra.mxu1 %v4014_v2 }
 0x138   :  { %2111 = vmatprep.subr.bf16.mxu1 %v4015_v6  ;;  %v3952_v6 = vld [vmem:[%s5524_s0 + $0x294] ss:$8 sps:$4 sm:$0xff]  }
 0x139   :  { %v4622_v18 = vpop.f32.mrb[32].mxu0 }
 0x13a   :  { %v4624_v20 = vpop.f32.mrb[33].mxu0 }
 0x13b   :  { %v4632_v30 = vpop.f32.mrb[34].mxu0  ;;  %2112 = vmatpush1.bf16.msra.mxu1 %v4017_v8 }
 0x13c   :  { %v4640_v35 = vpop.f32.mrb[35].mxu0  ;;  %2113 = vmatprep.subr.bf16.mxu1 %v4018_v26 }
 0x13e   :  { %1202 = vmatmul.mubr.bf16.gmra.mrb[140].mxu0 %v3936_v24  ;;  %v3945_v24 = vld [vmem:[%s5524_s0 + $0x260] ss:$8 sps:$4 sm:$0xff]  }
 0x13f   :  { %3451 = vmatprep.mubr.msk.bf16.mxu0 %vm667_vm0, %v3937_v32  ;;  %2114 = vmatpush1.bf16.msra.mxu1 %v4020_v36 }
 0x141   :  { %v4649_v41 = vpop.f32.mrb[36].mxu0 }
 0x142   :  { %v4651_v42 = vpop.f32.mrb[37].mxu0 }
 0x143   :  { %v4659_v46 = vpop.f32.mrb[38].mxu0 }
 0x144   :  { %v4667_v52 = vpop.f32.mrb[39].mxu0 }
 0x146   :  { %1212 = vmatmul.mubr.bf16.gmra.mrb[144].mxu0 %v3939_v44 }
 0x147   :  { %3452 = vmatprep.mubr.msk.bf16.mxu0 %vm667_vm0, %v3940_v48  ;;  %v3948_v48 = vld [vmem:[%s5524_s0 + $0x270] ss:$8 sps:$4 sm:$0xff]  }
 0x149   :  { %v4676_v56 = vpop.f32.mrb[40].mxu0 }
 0x14a   :  { %v4678_v58 = vpop.f32.mrb[41].mxu0 }
 0x14b   :  { %v4686_v0 = vpop.f32.mrb[42].mxu0 }
 0x14c   :  { %v4694_v4 = vpop.f32.mrb[43].mxu0 }
 0x14e   :  { %1222 = vmatmul.mubr.bf16.gmra.mrb[148].mxu0 %v3942_v60 }
 0x14f   :  { %3453 = vmatprep.mubr.msk.bf16.mxu0 %vm667_vm0, %v3943_v1  ;;  %v3951_v1 = vld [vmem:[%s5524_s0 + $0x280] ss:$8 sps:$4 sm:$0xff]  }
 0x151   :  { %v4703_v12 = vpop.f32.mrb[44].mxu0 }
 0x152   :  { %v4705_v14 = vpop.f32.mrb[45].mxu0 }
 0x153   :  { %v4713_v32 = vpop.f32.mrb[46].mxu0 }
 0x154   :  { %v4721_v39 = vpop.f32.mrb[47].mxu0 }
 0x156   :  { %1232 = vmatmul.mubr.bf16.gmra.mrb[152].mxu0 %v3945_v24 }
 0x157   :  { %3454 = vmatprep.mubr.msk.bf16.mxu0 %vm667_vm0, %v3946_v34  ;;  %v3954_v34 = vld [vmem:[%s5524_s0 + $0x290] ss:$8 sps:$4 sm:$0xff]  }
 0x159   :  { %v4724_v44 = vpop.f32.mrb[48].mxu0 }
 0x15a   :  { %5533 = vst [vmem:[#allocation2_spill] sm:$0xff] %v4724_v44  ;;  %v4726_v45 = vpop.f32.mrb[49].mxu0 }
 0x15b   :  { %5534 = vst [vmem:[#allocation3_spill] sm:$0xff] %v4726_v45  ;;  %v4731_v50 = vpop.f32.mrb[50].mxu0 }
 0x15c   :  { %5535 = vst [vmem:[#allocation4_spill] sm:$0xff] %v4731_v50  ;;  %v4736_v55 = vpop.f32.mrb[51].mxu0 }
 0x15d   :  { %5536 = vst [vmem:[#allocation5_spill] sm:$0xff] %v4736_v55 }
 0x15e   :  { %1242 = vmatmul.mubr.bf16.gmra.mrb[156].mxu0 %v3948_v48  ;;  %v3955_v48 = vld [vmem:[%s5524_s0 + $0x2a4] ss:$8 sps:$4 sm:$0xff]  }
 0x15f   :  { %3455 = vmatprep.mubr.msk.bf16.mxu0 %vm667_vm0, %v3949_v54 }
 0x161   :  { %v4739_v60 = vpop.f32.mrb[52].mxu0 }
 0x162   :  { %5537 = vst [vmem:[#allocation6_spill] sm:$0xff] %v4739_v60  ;;  %v4741_v62 = vpop.f32.mrb[53].mxu0 }
 0x163   :  { %5538 = vst [vmem:[#allocation7_spill] sm:$0xff] %v4741_v62  ;;  %v4746_v2 = vpop.f32.mrb[54].mxu0 }
 0x164   :  { %5539 = vst [vmem:[#allocation8_spill] sm:$0xff] %v4746_v2  ;;  %v4751_v8 = vpop.f32.mrb[55].mxu0 }
 0x165   :  { %5540 = vst [vmem:[#allocation9_spill] sm:$0xff] %v4751_v8 }
 0x166   :  { %1252 = vmatmul.mubr.bf16.gmra.mrb[160].mxu0 %v3951_v1 }
 0x167   :  { %3456 = vmatprep.mubr.msk.bf16.mxu0 %vm667_vm0, %v3952_v6 }
 0x169   :  { %v4754_v24 = vpop.f32.mrb[56].mxu0 }
 0x16a   :  { %5541 = vst [vmem:[#allocation10_spill] sm:$0xff] %v4754_v24  ;;  %v4756_v26 = vpop.f32.mrb[57].mxu0 }
 0x16b   :  { %5542 = vst [vmem:[#allocation11_spill] sm:$0xff] %v4756_v26  ;;  %v4761_v36 = vpop.f32.mrb[58].mxu0  ;;  %v3957_v26 = vld [vmem:[%s5524_s0 + $0x2a0] ss:$8 sps:$4 sm:$0xff]  }
 0x16c   :  { %5543 = vst [vmem:[#allocation12_spill] sm:$0xff] %v4761_v36  ;;  %v4766_v54 = vpop.f32.mrb[59].mxu0  ;;  %v3958_v36 = vld [vmem:[%s5524_s0 + $0x2b4] ss:$8 sps:$4 sm:$0xff]  }
 0x16d   :  { %5544 = vst [vmem:[#allocation13_spill] sm:$0xff] %v4766_v54 }
 0x16e   :  { %1262 = vmatmul.mubr.bf16.gmra.mrb[164].mxu0 %v3954_v34 }
 0x16f   :  { %3457 = vmatprep.mubr.msk.bf16.mxu0 %vm667_vm0, %v3955_v48 }
 0x171   :  { %v4769_v1 = vpop.f32.mrb[60].mxu0 }
 0x172   :  { %5545 = vst [vmem:[#allocation14_spill] sm:$0xff] %v4769_v1  ;;  %v4771_v6 = vpop.f32.mrb[61].mxu0 }
 0x173   :  { %5546 = vst [vmem:[#allocation15_spill] sm:$0xff] %v4771_v6  ;;  %v4776_v24 = vpop.f32.mrb[62].mxu0  ;;  %v3960_v6 = vld [vmem:[%s5524_s0 + $0x2b0] ss:$8 sps:$4 sm:$0xff]  }
 0x174   :  { %5547 = vst [vmem:[#allocation16_spill] sm:$0xff] %v4776_v24  ;;  %v4781_v8 = vpop.f32.mrb[63].mxu0  ;;  %v3961_v24 = vld [vmem:[%s5524_s0 + $0x2c4] ss:$8 sps:$4 sm:$0xff]  }
 0x175   :  { %5548 = vst [vmem:[#allocation17_spill] sm:$0xff] %v4781_v8 }
 0x176   :  { %1272 = vmatmul.mubr.bf16.gmra.mrb[168].mxu0 %v3957_v26 }
 0x177   :  { %3458 = vmatprep.mubr.msk.bf16.mxu0 %vm667_vm0, %v3958_v36 }
 0x179   :  { %v4784_v34 = vpop.f32.mrb[64].mxu0 }
 0x17a   :  { %5549 = vst [vmem:[#allocation18_spill] sm:$0xff] %v4784_v34  ;;  %v4786_v48 = vpop.f32.mrb[65].mxu0 }
 0x17b   :  { %5550 = vst [vmem:[#allocation19_spill] sm:$0xff] %v4786_v48  ;;  %v4791_v1 = vpop.f32.mrb[66].mxu0  ;;  %v3963_v48 = vld [vmem:[%s5524_s0 + $0x2c0] ss:$8 sps:$4 sm:$0xff]  }
 0x17c   :  { %5551 = vst [vmem:[#allocation20_spill] sm:$0xff] %v4791_v1  ;;  %v4796_v54 = vpop.f32.mrb[67].mxu0  ;;  %v3964_v1 = vld [vmem:[%s5524_s0 + $0x2d4] ss:$8 sps:$4 sm:$0xff]  }
 0x17d   :  { %5552 = vst [vmem:[#allocation21_spill] sm:$0xff] %v4796_v54 }
 0x17e   :  { %1282 = vmatmul.mubr.bf16.gmra.mrb[172].mxu0 %v3960_v6 }
 0x17f   :  { %3459 = vmatprep.mubr.msk.bf16.mxu0 %vm667_vm0, %v3961_v24 }
 0x181   :  { %v4799_v26 = vpop.f32.mrb[68].mxu0 }
 0x182   :  { %5553 = vst [vmem:[#allocation22_spill] sm:$0xff] %v4799_v26  ;;  %v4801_v36 = vpop.f32.mrb[69].mxu0 }
 0x183   :  { %5554 = vst [vmem:[#allocation23_spill] sm:$0xff] %v4801_v36  ;;  %v4806_v34 = vpop.f32.mrb[70].mxu0  ;;  %v3966_v36 = vld [vmem:[%s5524_s0 + $0x2d0] ss:$8 sps:$4 sm:$0xff]  }
 0x184   :  { %5555 = vst [vmem:[#allocation24_spill] sm:$0xff] %v4806_v34  ;;  %v4811_v8 = vpop.f32.mrb[71].mxu0  ;;  %v3967_v34 = vld [vmem:[%s5524_s0 + $0x2e4] ss:$8 sps:$4 sm:$0xff]  }
 0x185   :  { %5556 = vst [vmem:[#allocation25_spill] sm:$0xff] %v4811_v8 }
 0x186   :  { %1292 = vmatmul.mubr.bf16.gmra.mrb[176].mxu0 %v3963_v48 }
 0x187   :  { %3460 = vmatprep.mubr.msk.bf16.mxu0 %vm667_vm0, %v3964_v1  ;;  %v4023_v1 = vld [vmem:[%s5525_s3 + $0x104] ss:$8 sps:$4 sm:$0xff]  }
 0x188   :  { %2276 = vmatprep.subr.bf16.mxu1 %v4023_v1  ;;  %v3978_v1 = vld [vmem:[%s5524_s0 + $0x2f0] ss:$8 sps:$4 sm:$0xff]  }
 0x189   :  { %v4814_v24 = vpop.f32.mrb[72].mxu0 }
 0x18a   :  { %5557 = vst [vmem:[#allocation26_spill] sm:$0xff] %v4814_v24  ;;  %v4816_v6 = vpop.f32.mrb[73].mxu0 }
 0x18b   :  { %5558 = vst [vmem:[#allocation27_spill] sm:$0xff] %v4816_v6  ;;  %v4821_v26 = vpop.f32.mrb[74].mxu0 }
 0x18c   :  { %5559 = vst [vmem:[#allocation28_spill] sm:$0xff] %v4821_v26  ;;  %v4826_v54 = vpop.f32.mrb[75].mxu0  ;;  %v3969_v26 = vld [vmem:[%s5524_s0 + $0x2e0] ss:$8 sps:$4 sm:$0xff]  }
 0x18d   :  { %5560 = vst [vmem:[#allocation29_spill] sm:$0xff] %v4826_v54  ;;  %v3975_v54 = vld [vmem:[%s5524_s0 + $0x2f4] ss:$8 sps:$4 sm:$0xff]  }
 0x18e   :  { %1302 = vmatmul.mubr.bf16.gmra.mrb[180].mxu0 %v3966_v36 }
 0x18f   :  { %3461 = vmatprep.mubr.msk.bf16.mxu0 %vm667_vm0, %v3967_v34 }
 0x191   :  { %v4832_v48 = vpop.f32.mrb[76].mxu0 }
 0x192   :  { %5561 = vst [vmem:[#allocation30_spill] sm:$0xff] %v4832_v48  ;;  %v4834_v6 = vpop.f32.mrb[77].mxu0 }
 0x193   :  { %5562 = vst [vmem:[#allocation31_spill] sm:$0xff] %v4834_v6  ;;  %v4839_v24 = vpop.f32.mrb[78].mxu0 }
 0x194   :  { %5563 = vst [vmem:[#allocation32_spill] sm:$0xff] %v4839_v24  ;;  %v4844_v8 = vpop.f32.mrb[79].mxu0 }
 0x195   :  { %5564 = vst [vmem:[#allocation33_spill] sm:$0xff] %v4844_v8 }
 0x196   :  { %1312 = vmatmul.mubr.bf16.gmra.mrb[184].mxu0 %v3969_v26 }
 0x197   :  { %3462 = vmatprep.mubr.msk.bf16.mxu0 %vm667_vm0, %v3975_v54 }
 0x199   :  { %v4847_v34 = vpop.f32.mrb[80].mxu0 }
 0x19a   :  { %5565 = vst [vmem:[#allocation34_spill] sm:$0xff] %v4847_v34  ;;  %v4849_v36 = vpop.f32.mrb[81].mxu0 }
 0x19b   :  { %5566 = vst [vmem:[#allocation35_spill] sm:$0xff] %v4849_v36  ;;  %v4854_v6 = vpop.f32.mrb[82].mxu0 }
 0x19c   :  { %5567 = vst [vmem:[#allocation36_spill] sm:$0xff] %v4854_v6  ;;  %v4856_v24 = vpop.f32.mrb[83].mxu0 }
 0x19d   :  { %5568 = vst [vmem:[#allocation37_spill] sm:$0xff] %v4856_v24 }
 0x19e   :  { %1322 = vmatmul.mubr.bf16.gmra.mrb[188].mxu0 %v3978_v1 }
 0x1a1   :  { %v4858_v48 = vpop.f32.mrb[84].mxu0 }
 0x1a2   :  { %5569 = vst [vmem:[#allocation38_spill] sm:$0xff] %v4858_v48  ;;  %v4860_v2 = vpop.f32.mrb[85].mxu0 }
 0x1a3   :  { %5570 = vst [vmem:[#allocation39_spill] sm:$0xff] %v4860_v2  ;;  %v4862_v26 = vpop.f32.mrb[86].mxu0 }
 0x1a4   :  { %5571 = vst [vmem:[#allocation40_spill] sm:$0xff] %v4862_v26  ;;  %v4864_v54 = vpop.f32.mrb[87].mxu0 }
 0x1a5   :  { %5572 = vst [vmem:[#allocation41_spill] sm:$0xff] %v4864_v54 }
 0x1a9   :  { %v4866_v34 = vpop.f32.mrb[88].mxu0 }
 0x1aa   :  { %5573 = vst [vmem:[#allocation42_spill] sm:$0xff] %v4866_v34  ;;  %v4868_v36 = vpop.f32.mrb[89].mxu0 }
 0x1ab   :  { %5574 = vst [vmem:[#allocation43_spill] sm:$0xff] %v4868_v36  ;;  %v4870_v8 = vpop.f32.mrb[90].mxu0 }
 0x1ac   :  { %5575 = vst [vmem:[#allocation44_spill] sm:$0xff] %v4870_v8  ;;  %v4872_v62 = vpop.f32.mrb[91].mxu0  ;;  %v4887_v8 = vld [vmem:[%s5526_s2] ss:$0 sm:$0xff] }
 0x1ad   :  { %5576 = vst [vmem:[#allocation45_spill] sm:$0xff] %v4872_v62 }
 0x1b1   :  { %v4874_v6 = vpop.f32.mrb[92].mxu0 }
 0x1b2   :  { %5577 = vst [vmem:[#allocation46_spill] sm:$0xff] %v4874_v6  ;;  %v4876_v24 = vpop.f32.mrb[93].mxu0 }
 0x1b3   :  { %5578 = vst [vmem:[#allocation47_spill] sm:$0xff] %v4876_v24  ;;  %v4878_v1 = vpop.f32.mrb[94].mxu0 }
 0x1b4   :  { %5579 = vst [vmem:[#allocation48_spill] sm:$0xff] %v4878_v1  ;;  %v4880_v48 = vpop.f32.mrb[95].mxu0 }
 0x1b5   :  { %5580 = vst [vmem:[#allocation49_spill] sm:$0xff] %v4880_v48 }
 0x1b9   :  { %v1093_v2 = vpop.f32.mrb[96].mxu0 }
 0x1ba   :  { %v1332_v26 = vmax.f32 %v4448_v10, %v1093_v2  ;;  %v1095_v54 = vpop.f32.mrb[97].mxu0 }
 0x1bb   :  { %v1333_v34 = vmax.f32 %v4450_v11, %v1095_v54  ;;  %v1097_v60 = vpop.f32.mrb[98].mxu0 }
 0x1bc   :  { %v1334_v6 = vmax.f32 %v4455_v13, %v1097_v60  ;;  %v1099_v62 = vpop.f32.mrb[99].mxu0 }
 0x1bd   :  { %v1428_v24 = vmax.f32 %v1332_v26, %v1333_v34  ;;  %v1335_v1 = vmax.f32 %v4460_v15, %v1099_v62 }
 0x1bf   :  { %v1483_v48 = vadd.f32 %v4887_v8, %v1428_v24  ;;  %v1429_v36 = vmax.f32 %v1334_v6, %v1335_v1 }
 0x1c1   :  { %v1484_v10 = vadd.f32 %v4887_v8, %v1429_v36  ;;  %v1103_v2 = vpop.f32.mrb[100].mxu0  ;;  %v1531_v55 = vmax.f32 %v1483_v48, 0.0 }
 0x1c2   :  { %v1336_v11 = vmax.f32 %v4463_v16, %v1103_v2  ;;  %v1105_v54 = vpop.f32.mrb[101].mxu0 }
 0x1c3   :  { %v1532_v50 = vmax.f32 %v1484_v10, 0.0  ;;  %v1337_v45 = vmax.f32 %v4465_v17, %v1105_v54  ;;  %v1107_v44 = vpop.f32.mrb[102].mxu0 }
 0x1c4   :  { %v1338_v13 = vmax.f32 %v4470_v19, %v1107_v44  ;;  %v1109_v60 = vpop.f32.mrb[103].mxu0 }
 0x1c5   :  { %v1430_v34 = vmax.f32 %v1336_v11, %v1337_v45  ;;  %v1339_v15 = vmax.f32 %v4475_v21, %v1109_v60  ;;  %v1579_v62 = vpack.c.bf16 %v1532_v50, %v1531_v55 }
 0x1c7   :  { %v1485_v24 = vadd.f32 %v4887_v8, %v1430_v34  ;;  %v1431_v6 = vmax.f32 %v1338_v13, %v1339_v15 }
 0x1c9   :  { %v1486_v36 = vadd.f32 %v4887_v8, %v1431_v6  ;;  %v1113_v26 = vpop.f32.mrb[104].mxu0  ;;  %v1533_v1 = vmax.f32 %v1485_v24, 0.0 }
 0x1ca   :  { %v1340_v16 = vmax.f32 %v4478_v22, %v1113_v26  ;;  %v1115_v48 = vpop.f32.mrb[105].mxu0 }
 0x1cb   :  { %v1534_v10 = vmax.f32 %v1486_v36, 0.0  ;;  %v1341_v17 = vmax.f32 %v4480_v23, %v1115_v48  ;;  %v1117_v2 = vpop.f32.mrb[106].mxu0 }
 0x1cc   :  { %v1342_v19 = vmax.f32 %v4485_v25, %v1117_v2  ;;  %v1119_v44 = vpop.f32.mrb[107].mxu0  ;;  %v4029_v2 = vld [vmem:[%s5525_s3 + $0x124] ss:$8 sps:$4 sm:$0xff]  }
 0x1cd   :  { %v1432_v45 = vmax.f32 %v1340_v16, %v1341_v17  ;;  %v1343_v21 = vmax.f32 %v4490_v27, %v1119_v44  ;;  %v1580_v50 = vpack.c.bf16 %v1534_v10, %v1533_v1  ;;  %v4021_v16 = vld [vmem:[%s5525_s3 + $0x100] ss:$8 sps:$4 sm:$0xff]  }
 0x1cf   :  { %v1433_v55 = vmax.f32 %v1342_v19, %v1343_v21  ;;  %v1487_v11 = vadd.f32 %v4887_v8, %v1432_v45 }
 0x1d1   :  { %v1123_v54 = vpop.f32.mrb[108].mxu0  ;;  %v1488_v13 = vadd.f32 %v4887_v8, %v1433_v55  ;;  %v1535_v15 = vmax.f32 %v1487_v11, 0.0 }
 0x1d2   :  { %v1344_v22 = vmax.f32 %v4493_v28, %v1123_v54  ;;  %v1125_v60 = vpop.f32.mrb[109].mxu0  ;;  %v4026_v28 = vld [vmem:[%s5525_s3 + $0x114] ss:$8 sps:$4 sm:$0xff]  }
 0x1d3   :  { %v1345_v34 = vmax.f32 %v4495_v29, %v1125_v60  ;;  %v1127_v23 = vpop.f32.mrb[110].mxu0  ;;  %v1536_v24 = vmax.f32 %v1488_v13, 0.0 }
 0x1d4   :  { %v1346_v25 = vmax.f32 %v4500_v31, %v1127_v23  ;;  %v1129_v6 = vpop.f32.mrb[111].mxu0 }
 0x1d5   :  { %v1434_v36 = vmax.f32 %v1344_v22, %v1345_v34  ;;  %v1347_v27 = vmax.f32 %v4505_v33, %v1129_v6  ;;  %v4909_v26 = vpack.c.bf16 %v1536_v24, %v1535_v15  ;;  %v4024_v33 = vld [vmem:[%s5525_s3 + $0x110] ss:$8 sps:$4 sm:$0xff]   ;;  %v4032_v22 = vld [vmem:[%s5525_s3 + $0x134] ss:$8 sps:$4 sm:$0xff]   ;;  %v4035_v24 = vld [vmem:[%s5525_s3 + $0x144] ss:$8 sps:$4 sm:$0xff]  }
 0x1d6   :  { %v4030_v34 = vld [vmem:[%s5525_s3 + $0x130] ss:$8 sps:$4 sm:$0xff]  }
 0x1d7   :  { %v1489_v29 = vadd.f32 %v4887_v8, %v1434_v36  ;;  %v1435_v48 = vmax.f32 %v1346_v25, %v1347_v27  ;;  %2115 = vmatprep.mubr.bf16.mxu1 %v4909_v26 }
 0x1d8   :  { %2116 = vmatmul.mubr.bf16.vlgmr.msra.gmra.mrb[0].mxu1 %v1579_v62 }
 0x1d9   :  { %v1490_v31 = vadd.f32 %v4887_v8, %v1435_v48  ;;  %v1133_v1 = vpop.f32.mrb[112].mxu0  ;;  %2277 = vmatpush1.bf16.msra.mxu1 %v4021_v16  ;;  %v1537_v19 = vmax.f32 %v1489_v29, 0.0 }
 0x1da   :  { %v1348_v10 = vmax.f32 %v4517_v37, %v1133_v1  ;;  %v1135_v17 = vpop.f32.mrb[113].mxu0  ;;  %2278 = vmatprep.subr.bf16.mxu1 %v4026_v28  ;;  %v4027_v37 = vld [vmem:[%s5525_s3 + $0x120] ss:$8 sps:$4 sm:$0xff]  }
 0x1db   :  { %v1538_v44 = vmax.f32 %v1490_v31, 0.0  ;;  %v1349_v62 = vmax.f32 %v4519_v38, %v1135_v17  ;;  %v1137_v45 = vpop.f32.mrb[114].mxu0  ;;  %v4038_v31 = vld [vmem:[%s5525_s3 + $0x154] ss:$8 sps:$4 sm:$0xff]  }
 0x1dc   :  { %v1350_v21 = vmax.f32 %v4524_v40, %v1137_v45  ;;  %v1139_v55 = vpop.f32.mrb[115].mxu0 }
 0x1dd   :  { %v1436_v11 = vmax.f32 %v1348_v10, %v1349_v62  ;;  %v1351_v54 = vmax.f32 %v4532_v43, %v1139_v55  ;;  %v4930_v13 = vpack.c.bf16 %v1538_v44, %v1537_v19  ;;  %2279 = vmatpush1.bf16.msra.mxu1 %v4024_v33 }
 0x1de   :  { %2280 = vmatprep.subr.bf16.mxu1 %v4029_v2  ;;  %v4041_v2 = vld [vmem:[%s5525_s3 + $0x164] ss:$8 sps:$4 sm:$0xff]  }
 0x1df   :  { %v1491_v38 = vadd.f32 %v4887_v8, %v1436_v11  ;;  %v1437_v60 = vmax.f32 %v1350_v21, %v1351_v54  ;;  %2125 = vmatprep.mubr.bf16.mxu1 %v4930_v13 }
 0x1e0   :  { %2126 = vmatmul.mubr.bf16.gmra.mrb[4].mxu1 %v1580_v50 }
 0x1e1   :  { %v1492_v40 = vadd.f32 %v4887_v8, %v1437_v60  ;;  %v1143_v43 = vpop.f32.mrb[116].mxu0  ;;  %2281 = vmatpush1.bf16.msra.mxu1 %v4027_v37  ;;  %v1539_v25 = vmax.f32 %v1491_v38, 0.0 }
 0x1e2   :  { %v1352_v23 = vmax.f32 %v4544_v47, %v1143_v43  ;;  %v1145_v15 = vpop.f32.mrb[117].mxu0  ;;  %2282 = vmatprep.subr.bf16.mxu1 %v4032_v22  ;;  %v4033_v47 = vld [vmem:[%s5525_s3 + $0x140] ss:$8 sps:$4 sm:$0xff]   ;;  %v4044_v22 = vld [vmem:[%s5525_s3 + $0x174] ss:$8 sps:$4 sm:$0xff]  }
 0x1e3   :  { %v1540_v6 = vmax.f32 %v1492_v40, 0.0  ;;  %v1353_v50 = vmax.f32 %v4549_v49, %v1145_v15  ;;  %v1147_v36 = vpop.f32.mrb[118].mxu0 }
 0x1e4   :  { %v1354_v27 = vmax.f32 %v4554_v51, %v1147_v36  ;;  %v1149_v16 = vpop.f32.mrb[119].mxu0 }
 0x1e5   :  { %v1438_v28 = vmax.f32 %v1352_v23, %v1353_v50  ;;  %v1355_v29 = vmax.f32 %v4559_v53, %v1149_v16  ;;  %v4951_v48 = vpack.c.bf16 %v1540_v6, %v1539_v25  ;;  %2283 = vmatpush1.bf16.msra.mxu1 %v4030_v34  ;;  %v4036_v53 = vld [vmem:[%s5525_s3 + $0x150] ss:$8 sps:$4 sm:$0xff]   ;;  %v4047_v34 = vld [vmem:[%s5525_s3 + $0x184] ss:$8 sps:$4 sm:$0xff]  }
 0x1e6   :  { %2284 = vmatprep.subr.bf16.mxu1 %v4035_v24 }
 0x1e7   :  { %v1493_v49 = vadd.f32 %v4887_v8, %v1438_v28  ;;  %v1439_v1 = vmax.f32 %v1354_v27, %v1355_v29  ;;  %v4050_v28 = vld [vmem:[%s5525_s3 + $0x194] ss:$8 sps:$4 sm:$0xff]  }
 0x1e9   :  { %v1494_v51 = vadd.f32 %v4887_v8, %v1439_v1  ;;  %v1153_v33 = vpop.f32.mrb[120].mxu0  ;;  %2285 = vmatpush1.bf16.msra.mxu1 %v4033_v47  ;;  %v1541_v19 = vmax.f32 %v1493_v49, 0.0  ;;  %v4048_v47 = vld [vmem:[%s5525_s3 + $0x190] ss:$8 sps:$4 sm:$0xff]   ;;  %v4053_v1 = vld [vmem:[%s5525_s3 + $0x1a4] ss:$8 sps:$4 sm:$0xff]  }
 0x1ea   :  { %v1356_v10 = vmax.f32 %v4571_v57, %v1153_v33  ;;  %v1155_v17 = vpop.f32.mrb[121].mxu0  ;;  %2286 = vmatprep.subr.bf16.mxu1 %v4038_v31  ;;  %v4039_v57 = vld [vmem:[%s5525_s3 + $0x160] ss:$8 sps:$4 sm:$0xff]  }
 0x1eb   :  { %v1542_v44 = vmax.f32 %v1494_v51, 0.0  ;;  %v1357_v62 = vmax.f32 %v4576_v59, %v1155_v17  ;;  %v1157_v45 = vpop.f32.mrb[122].mxu0 }
 0x1ec   :  { %v1358_v21 = vmax.f32 %v4581_v61, %v1157_v45  ;;  %v1159_v55 = vpop.f32.mrb[123].mxu0  ;;  %v4056_v45 = vld [vmem:[%s5525_s3 + $0x1b4] ss:$8 sps:$4 sm:$0xff]  }
 0x1ed   :  { %v1440_v11 = vmax.f32 %v1356_v10, %v1357_v62  ;;  %v1359_v54 = vmax.f32 %v4586_v63, %v1159_v55  ;;  %v4971_v37 = vpack.c.bf16 %v1542_v44, %v1541_v19  ;;  %2287 = vmatpush1.bf16.msra.mxu1 %v4036_v53  ;;  %v4042_v63 = vld [vmem:[%s5525_s3 + $0x170] ss:$8 sps:$4 sm:$0xff]  }
 0x1ee   :  { %2288 = vmatprep.subr.bf16.mxu1 %v4041_v2  ;;  %v4054_v55 = vld [vmem:[%s5525_s3 + $0x1b0] ss:$8 sps:$4 sm:$0xff]  }
 0x1ef   :  { %v1495_v59 = vadd.f32 %v4887_v8, %v1440_v11  ;;  %v1441_v38 = vmax.f32 %v1358_v21, %v1359_v54 }
 0x1f1   :  { %v1496_v61 = vadd.f32 %v4887_v8, %v1441_v38  ;;  %v1163_v60 = vpop.f32.mrb[124].mxu0  ;;  %2289 = vmatpush1.bf16.msra.mxu1 %v4039_v57  ;;  %v1543_v23 = vmax.f32 %v1495_v59, 0.0  ;;  %v4059_v57 = vld [vmem:[%s5525_s3 + $0x1c4] ss:$8 sps:$4 sm:$0xff]  }
 0x1f2   :  { %v1360_v40 = vmax.f32 %v4598_v3, %v1163_v60  ;;  %v1165_v43 = vpop.f32.mrb[125].mxu0  ;;  %2290 = vmatprep.subr.bf16.mxu1 %v4044_v22  ;;  %v4045_v3 = vld [vmem:[%s5525_s3 + $0x180] ss:$8 sps:$4 sm:$0xff]  }
 0x1f3   :  { %v1544_v15 = vmax.f32 %v1496_v61, 0.0  ;;  %v1361_v24 = vmax.f32 %v4603_v5, %v1165_v43  ;;  %v1167_v25 = vpop.f32.mrb[126].mxu0 }
 0x1f4   :  { %v1362_v6 = vmax.f32 %v4608_v7, %v1167_v25  ;;  %v1169_v50 = vpop.f32.mrb[127].mxu0 }
 0x1f5   :  { %v4990_v36 = vpack.c.bf16 %v1544_v15, %v1543_v23  ;;  %v1442_v27 = vmax.f32 %v1360_v40, %v1361_v24  ;;  %v1363_v16 = vmax.f32 %v4613_v9, %v1169_v50  ;;  %2291 = vmatpush1.bf16.msra.mxu1 %v4042_v63  ;;  %v4062_v23 = vld [vmem:[%s5525_s3 + $0x1d4] ss:$8 sps:$4 sm:$0xff]   ;;  %v4065_v50 = vld [vmem:[%s5525_s3 + $0x1e4] ss:$8 sps:$4 sm:$0xff]  }
 0x1f6   :  { %2292 = vmatprep.subr.bf16.mxu1 %v4047_v34 }
 0x1f7   :  { %v1497_v5 = vadd.f32 %v4887_v8, %v1442_v27  ;;  %v1443_v29 = vmax.f32 %v1362_v6, %v1363_v16  ;;  %2135 = vmatprep.mubr.bf16.mxu1 %v4990_v36 }
 0x1f8   :  { %2136 = vmatmul.mubr.bf16.gmra.mrb[8].mxu1 %v4951_v48 }
 0x1f9   :  { %v1498_v7 = vadd.f32 %v4887_v8, %v1443_v29  ;;  %v1173_v9 = vpop.f32.mrb[128].mxu0  ;;  %2293 = vmatpush1.bf16.msra.mxu1 %v4045_v3  ;;  %v1545_v51 = vmax.f32 %v1497_v5, 0.0 }
 0x1fa   :  { %v1364_v31 = vmax.f32 %v4622_v18, %v1173_v9  ;;  %v1175_v49 = vpop.f32.mrb[129].mxu0  ;;  %2294 = vmatprep.subr.bf16.mxu1 %v4050_v28  ;;  %v4051_v18 = vld [vmem:[%s5525_s3 + $0x1a0] ss:$8 sps:$4 sm:$0xff]  }
 0x1fb   :  { %v1546_v33 = vmax.f32 %v1498_v7, 0.0  ;;  %v1365_v53 = vmax.f32 %v4624_v20, %v1175_v49  ;;  %v1177_v10 = vpop.f32.mrb[130].mxu0 }
 0x1fc   :  { %v1366_v17 = vmax.f32 %v4632_v30, %v1177_v10  ;;  %v1179_v2 = vpop.f32.mrb[131].mxu0 }
 0x1fd   :  { %v5012_v19 = vpack.c.bf16 %v1546_v33, %v1545_v51  ;;  %v1444_v44 = vmax.f32 %v1364_v31, %v1365_v53  ;;  %v1367_v62 = vmax.f32 %v4640_v35, %v1179_v2  ;;  %2295 = vmatpush1.bf16.msra.mxu1 %v4048_v47  ;;  %v4068_v31 = vld [vmem:[%s5525_s3 + $0x1f4] ss:$8 sps:$4 sm:$0xff]   ;;  %v4071_v53 = vld [vmem:[%s5525_s3 + $0x204] ss:$8 sps:$4 sm:$0xff]  }
 0x1fe   :  { %2296 = vmatprep.subr.bf16.mxu1 %v4053_v1 }
 0x1ff   :  { %v1499_v20 = vadd.f32 %v4887_v8, %v1444_v44  ;;  %v1445_v21 = vmax.f32 %v1366_v17, %v1367_v62  ;;  %2145 = vmatprep.mubr.bf16.mxu1 %v5012_v19 }
 0x200   :  { %2146 = vmatmul.mubr.bf16.gmra.mrb[12].mxu1 %v4971_v37 }
 0x201   :  { %v1500_v30 = vadd.f32 %v4887_v8, %v1445_v21  ;;  %v1183_v35 = vpop.f32.mrb[132].mxu0  ;;  %2297 = vmatpush1.bf16.msra.mxu1 %v4051_v18  ;;  %v1547_v22 = vmax.f32 %v1499_v20, 0.0 }
 0x202   :  { %v1368_v11 = vmax.f32 %v4649_v41, %v1183_v35  ;;  %v1185_v54 = vpop.f32.mrb[133].mxu0  ;;  %2298 = vmatprep.subr.bf16.mxu1 %v4056_v45  ;;  %v4057_v41 = vld [vmem:[%s5525_s3 + $0x1c0] ss:$8 sps:$4 sm:$0xff]  }
 0x203   :  { %v1548_v59 = vmax.f32 %v1500_v30, 0.0  ;;  %v1369_v38 = vmax.f32 %v4651_v42, %v1185_v54  ;;  %v1187_v61 = vpop.f32.mrb[134].mxu0 }
 0x204   :  { %v1370_v60 = vmax.f32 %v4659_v46, %v1187_v61  ;;  %v1189_v63 = vpop.f32.mrb[135].mxu0 }
 0x205   :  { %v5034_v40 = vpack.c.bf16 %v1548_v59, %v1547_v22  ;;  %v1446_v43 = vmax.f32 %v1368_v11, %v1369_v38  ;;  %v1371_v34 = vmax.f32 %v4667_v52, %v1189_v63  ;;  %2299 = vmatpush1.bf16.msra.mxu1 %v4054_v55  ;;  %v4060_v52 = vld [vmem:[%s5525_s3 + $0x1d0] ss:$8 sps:$4 sm:$0xff]   ;;  %v5581_v55 = vld [vmem:[#allocation2_spill] sm:$0xff]  ;;  %v5582_v22 = vld [vmem:[#allocation3_spill] sm:$0xff] }
 0x206   :  { %2300 = vmatprep.subr.bf16.mxu1 %v4059_v57  ;;  %v5583_v38 = vld [vmem:[#allocation4_spill] sm:$0xff] }
 0x207   :  { %v1501_v42 = vadd.f32 %v4887_v8, %v1446_v43  ;;  %v1447_v15 = vmax.f32 %v1370_v60, %v1371_v34  ;;  %v5584_v34 = vld [vmem:[#allocation5_spill] sm:$0xff] }
 0x209   :  { %v1502_v46 = vadd.f32 %v4887_v8, %v1447_v15  ;;  %v1193_v24 = vpop.f32.mrb[136].mxu0  ;;  %2301 = vmatpush1.bf16.msra.mxu1 %v4057_v41  ;;  %v1549_v27 = vmax.f32 %v1501_v42, 0.0 }
 0x20a   :  { %v1372_v25 = vmax.f32 %v4676_v56, %v1193_v24  ;;  %v1195_v6 = vpop.f32.mrb[137].mxu0  ;;  %2302 = vmatprep.subr.bf16.mxu1 %v4062_v23  ;;  %v4063_v56 = vld [vmem:[%s5525_s3 + $0x1e0] ss:$8 sps:$4 sm:$0xff]  }
 0x20b   :  { %v1550_v16 = vmax.f32 %v1502_v46, 0.0  ;;  %v1373_v3 = vmax.f32 %v4678_v58, %v1195_v6  ;;  %v1197_v28 = vpop.f32.mrb[138].mxu0  ;;  %v5585_v24 = vld [vmem:[#allocation6_spill] sm:$0xff] }
 0x20c   :  { %v1374_v5 = vmax.f32 %v4686_v0, %v1197_v28  ;;  %v1199_v29 = vpop.f32.mrb[139].mxu0  ;;  %v5587_v28 = vld [vmem:[#allocation8_spill] sm:$0xff] }
 0x20d   :  { %v5054_v7 = vpack.c.bf16 %v1550_v16, %v1549_v27  ;;  %v1448_v9 = vmax.f32 %v1372_v25, %v1373_v3  ;;  %v1375_v47 = vmax.f32 %v4694_v4, %v1199_v29  ;;  %2303 = vmatpush1.bf16.msra.mxu1 %v4060_v52  ;;  %v4066_v4 = vld [vmem:[%s5525_s3 + $0x1f0] ss:$8 sps:$4 sm:$0xff]   ;;  %v5586_v27 = vld [vmem:[#allocation7_spill] sm:$0xff] }
 0x20e   :  { %2304 = vmatprep.subr.bf16.mxu1 %v4065_v50 }
 0x20f   :  { %v1503_v58 = vadd.f32 %v4887_v8, %v1448_v9  ;;  %v1449_v49 = vmax.f32 %v1374_v5, %v1375_v47 }
 0x211   :  { %v1504_v0 = vadd.f32 %v4887_v8, %v1449_v49  ;;  %v1203_v1 = vpop.f32.mrb[140].mxu0  ;;  %2305 = vmatpush1.bf16.msra.mxu1 %v4063_v56  ;;  %v1551_v10 = vmax.f32 %v1503_v58, 0.0  ;;  %v5588_v56 = vld [vmem:[#allocation9_spill] sm:$0xff] }
 0x212   :  { %v1376_v51 = vmax.f32 %v4703_v12, %v1203_v1  ;;  %v1205_v33 = vpop.f32.mrb[141].mxu0  ;;  %2306 = vmatprep.subr.bf16.mxu1 %v4068_v31 }
 0x213   :  { %v1552_v17 = vmax.f32 %v1504_v0, 0.0  ;;  %v1377_v2 = vmax.f32 %v4705_v14, %v1205_v33  ;;  %v1207_v44 = vpop.f32.mrb[142].mxu0 }
 0x214   :  { %v1378_v62 = vmax.f32 %v4713_v32, %v1207_v44  ;;  %v1209_v18 = vpop.f32.mrb[143].mxu0 }
 0x215   :  { %v5074_v45 = vpack.c.bf16 %v1552_v17, %v1551_v10  ;;  %v1450_v20 = vmax.f32 %v1376_v51, %v1377_v2  ;;  %v1379_v21 = vmax.f32 %v4721_v39, %v1209_v18  ;;  %2307 = vmatpush1.bf16.msra.mxu1 %v4066_v4  ;;  %v5589_v4 = vld [vmem:[#allocation10_spill] sm:$0xff]  ;;  %v5590_v17 = vld [vmem:[#allocation11_spill] sm:$0xff] }
 0x216   :  { %2469 = vmatprep.subr.bf16.mxu1 %v4071_v53 }
 0x217   :  { %v1505_v12 = vadd.f32 %v4887_v8, %v1450_v20  ;;  %v1451_v30 = vmax.f32 %v1378_v62, %v1379_v21  ;;  %2155 = vmatprep.mubr.bf16.mxu1 %v5074_v45  ;;  %v5591_v62 = vld [vmem:[#allocation12_spill] sm:$0xff] }
 0x218   :  { %2156 = vmatmul.mubr.bf16.gmra.mrb[16].mxu1 %v5034_v40 }
 0x219   :  { %v1506_v14 = vadd.f32 %v4887_v8, %v1451_v30  ;;  %v1213_v35 = vpop.f32.mrb[144].mxu0  ;;  %v1553_v54 = vmax.f32 %v1505_v12, 0.0  ;;  %v5592_v30 = vld [vmem:[#allocation13_spill] sm:$0xff] }
 0x21a   :  { %v1380_v32 = vmax.f32 %v5581_v55, %v1213_v35  ;;  %v1215_v11 = vpop.f32.mrb[145].mxu0 }
 0x21b   :  { %v1554_v57 = vmax.f32 %v1506_v14, 0.0  ;;  %v1381_v59 = vmax.f32 %v5582_v22, %v1215_v11  ;;  %v1217_v39 = vpop.f32.mrb[146].mxu0 }
 0x21c   :  { %v1382_v61 = vmax.f32 %v5583_v38, %v1217_v39  ;;  %v1219_v60 = vpop.f32.mrb[147].mxu0  ;;  %v5594_v38 = vld [vmem:[#allocation15_spill] sm:$0xff] }
 0x21d   :  { %v5084_v63 = vpack.c.bf16 %v1554_v57, %v1553_v54  ;;  %v1452_v43 = vmax.f32 %v1380_v32, %v1381_v59  ;;  %v1383_v41 = vmax.f32 %v5584_v34, %v1219_v60  ;;  %v5593_v54 = vld [vmem:[#allocation14_spill] sm:$0xff] }
 0x21f   :  { %v1507_v23 = vadd.f32 %v4887_v8, %v1452_v43  ;;  %v1453_v42 = vmax.f32 %v1382_v61, %v1383_v41  ;;  %2165 = vmatprep.mubr.bf16.mxu1 %v5084_v63  ;;  %v5595_v43 = vld [vmem:[#allocation16_spill] sm:$0xff] }
 0x220   :  { %2166 = vmatmul.mubr.bf16.gmra.mrb[20].mxu1 %v5054_v7 }
 0x221   :  { %v1508_v15 = vadd.f32 %v4887_v8, %v1453_v42  ;;  %v1223_v46 = vpop.f32.mrb[148].mxu0  ;;  %v1555_v6 = vmax.f32 %v1507_v23, 0.0 }
 0x222   :  { %v1384_v52 = vmax.f32 %v5585_v24, %v1223_v46  ;;  %v1225_v25 = vpop.f32.mrb[149].mxu0 }
 0x223   :  { %v1556_v50 = vmax.f32 %v1508_v15, 0.0  ;;  %v1385_v16 = vmax.f32 %v5586_v27, %v1225_v25  ;;  %v1227_v3 = vpop.f32.mrb[150].mxu0  ;;  %v5596_v15 = vld [vmem:[#allocation17_spill] sm:$0xff] }
 0x224   :  { %v1386_v5 = vmax.f32 %v5587_v28, %v1227_v3  ;;  %v1229_v29 = vpop.f32.mrb[151].mxu0 }
 0x225   :  { %v5094_v9 = vpack.c.bf16 %v1556_v50, %v1555_v6  ;;  %v1454_v47 = vmax.f32 %v1384_v52, %v1385_v16  ;;  %v1387_v31 = vmax.f32 %v5588_v56, %v1229_v29  ;;  %v5597_v50 = vld [vmem:[#allocation18_spill] sm:$0xff]  ;;  %v5599_v56 = vld [vmem:[#allocation20_spill] sm:$0xff] }
 0x227   :  { %v1509_v58 = vadd.f32 %v4887_v8, %v1454_v47  ;;  %v1455_v49 = vmax.f32 %v1386_v5, %v1387_v31  ;;  %v5598_v5 = vld [vmem:[#allocation19_spill] sm:$0xff] }
 0x229   :  { %v1510_v0 = vadd.f32 %v4887_v8, %v1455_v49  ;;  %v1233_v1 = vpop.f32.mrb[152].mxu0  ;;  %v1557_v53 = vmax.f32 %v1509_v58, 0.0 }
 0x22a   :  { %v1388_v51 = vmax.f32 %v5589_v4, %v1233_v1  ;;  %v1235_v33 = vpop.f32.mrb[153].mxu0  ;;  %v5600_v1 = vld [vmem:[#allocation21_spill] sm:$0xff] }
 0x22b   :  { %v1558_v10 = vmax.f32 %v1510_v0, 0.0  ;;  %v1389_v2 = vmax.f32 %v5590_v17, %v1235_v33  ;;  %v1237_v44 = vpop.f32.mrb[154].mxu0  ;;  %v5601_v17 = vld [vmem:[#allocation22_spill] sm:$0xff] }
 0x22c   :  { %v1390_v18 = vmax.f32 %v5591_v62, %v1237_v44  ;;  %v1239_v20 = vpop.f32.mrb[155].mxu0 }
 0x22d   :  { %v5102_v21 = vpack.c.bf16 %v1558_v10, %v1557_v53  ;;  %v1456_v12 = vmax.f32 %v1388_v51, %v1389_v2  ;;  %v1391_v14 = vmax.f32 %v5592_v30, %v1239_v20  ;;  %v5602_v20 = vld [vmem:[#allocation23_spill] sm:$0xff] }
 0x22f   :  { %v1511_v35 = vadd.f32 %v4887_v8, %v1456_v12  ;;  %v1457_v55 = vmax.f32 %v1390_v18, %v1391_v14  ;;  %v5603_v14 = vld [vmem:[#allocation24_spill] sm:$0xff] }
 0x231   :  { %v1512_v32 = vadd.f32 %v4887_v8, %v1457_v55  ;;  %v1243_v11 = vpop.f32.mrb[156].mxu0  ;;  %v1559_v59 = vmax.f32 %v1511_v35, 0.0 }
 0x232   :  { %v1392_v57 = vmax.f32 %v5593_v54, %v1243_v11  ;;  %v1245_v22 = vpop.f32.mrb[157].mxu0  ;;  %v5604_v54 = vld [vmem:[#allocation25_spill] sm:$0xff] }
 0x233   :  { %v1560_v39 = vmax.f32 %v1512_v32, 0.0  ;;  %v1393_v61 = vmax.f32 %v5594_v38, %v1245_v22  ;;  %v1247_v60 = vpop.f32.mrb[158].mxu0 }
 0x234   :  { %v1394_v34 = vmax.f32 %v5595_v43, %v1247_v60  ;;  %v1249_v41 = vpop.f32.mrb[159].mxu0 }
 0x235   :  { %v5110_v23 = vpack.c.bf16 %v1560_v39, %v1559_v59  ;;  %v1458_v42 = vmax.f32 %v1392_v57, %v1393_v61  ;;  %v1395_v46 = vmax.f32 %v5596_v15, %v1249_v41  ;;  %v5605_v61 = vld [vmem:[#allocation26_spill] sm:$0xff] }
 0x237   :  { %v1513_v24 = vadd.f32 %v4887_v8, %v1458_v42  ;;  %v1459_v52 = vmax.f32 %v1394_v34, %v1395_v46  ;;  %2175 = vmatprep.mubr.bf16.mxu1 %v5110_v23  ;;  %v5606_v42 = vld [vmem:[#allocation27_spill] sm:$0xff] }
 0x238   :  { %2176 = vmatmul.mubr.bf16.gmra.mrb[24].mxu1 %v5094_v9 }
 0x239   :  { %v1514_v25 = vadd.f32 %v4887_v8, %v1459_v52  ;;  %v1253_v6 = vpop.f32.mrb[160].mxu0  ;;  %v1561_v3 = vmax.f32 %v1513_v24, 0.0  ;;  %v5607_v24 = vld [vmem:[#allocation28_spill] sm:$0xff] }
 0x23a   :  { %v1396_v27 = vmax.f32 %v5597_v50, %v1253_v6  ;;  %v1255_v16 = vpop.f32.mrb[161].mxu0 }
 0x23b   :  { %v1562_v28 = vmax.f32 %v1514_v25, 0.0  ;;  %v1397_v29 = vmax.f32 %v5598_v5, %v1255_v16  ;;  %v1257_v47 = vpop.f32.mrb[162].mxu0 }
 0x23c   :  { %v1398_v31 = vmax.f32 %v5599_v56, %v1257_v47  ;;  %v1259_v58 = vpop.f32.mrb[163].mxu0  ;;  %v5609_v47 = vld [vmem:[#allocation30_spill] sm:$0xff] }
 0x23d   :  { %v5120_v49 = vpack.c.bf16 %v1562_v28, %v1561_v3  ;;  %v1460_v0 = vmax.f32 %v1396_v27, %v1397_v29  ;;  %v1399_v4 = vmax.f32 %v5600_v1, %v1259_v58  ;;  %v4087_v58 = vld [vmem:[%s5527_s5 + $0x40] sm:$0xff]   ;;  %v5610_v1 = vld [vmem:[#allocation31_spill] sm:$0xff] }
 0x23e   :  { %3587 = vmatprep.subr.bf16.mxu0 %v4087_v58 }
 0x23f   :  { %v1515_v51 = vadd.f32 %v4887_v8, %v1460_v0  ;;  %v1461_v33 = vmax.f32 %v1398_v31, %v1399_v4  ;;  %2185 = vmatprep.mubr.bf16.mxu1 %v5120_v49 }
 0x240   :  { %2186 = vmatmul.mubr.bf16.gmra.mrb[28].mxu1 %v5102_v21 }
 0x241   :  { %v1516_v53 = vadd.f32 %v4887_v8, %v1461_v33  ;;  %v1263_v10 = vpop.f32.mrb[164].mxu0  ;;  %2195 = vmatprep.mubr.bf16.mxu1 %v4951_v48  ;;  %v1563_v62 = vmax.f32 %v1515_v51, 0.0  ;;  %v5611_v33 = vld [vmem:[#allocation32_spill] sm:$0xff] }
 0x242   :  { %v1400_v2 = vmax.f32 %v5601_v17, %v1263_v10  ;;  %v1265_v44 = vpop.f32.mrb[165].mxu0  ;;  %v5612_v17 = vld [vmem:[#allocation33_spill] sm:$0xff] }
 0x243   :  { %v1564_v18 = vmax.f32 %v1516_v53, 0.0  ;;  %v1401_v12 = vmax.f32 %v5602_v20, %v1265_v44  ;;  %v1267_v30 = vpop.f32.mrb[166].mxu0  ;;  %v4088_v20 = vld [vmem:[%s5527_s5] sm:$0xff]  }
 0x244   :  { %v1402_v35 = vmax.f32 %v5603_v14, %v1267_v30  ;;  %v1269_v55 = vpop.f32.mrb[167].mxu0  ;;  %3588 = vmatpush3.bf16.msra.mxu0 %v4088_v20 }
 0x245   :  { %v5131_v32 = vpack.c.bf16 %v1564_v18, %v1563_v62  ;;  %v1462_v11 = vmax.f32 %v1400_v2, %v1401_v12  ;;  %v1403_v57 = vmax.f32 %v5604_v54, %v1269_v55 }
 0x247   :  { %v1517_v22 = vadd.f32 %v4887_v8, %v1462_v11  ;;  %v1463_v59 = vmax.f32 %v1402_v35, %v1403_v57  ;;  %v5613_v35 = vld [vmem:[#allocation34_spill] sm:$0xff]  ;;  %v5614_v57 = vld [vmem:[#allocation35_spill] sm:$0xff] }
 0x248   :  { %2196 = vmatmul.mubr.bf16.gmra.mrb[32].mxu1 %v4909_v26  ;;  %v5608_v26 = vld [vmem:[#allocation29_spill] sm:$0xff] }
 0x249   :  { %v1518_v39 = vadd.f32 %v4887_v8, %v1463_v59  ;;  %v1273_v38 = vpop.f32.mrb[168].mxu0  ;;  %2205 = vmatprep.mubr.bf16.mxu1 %v4971_v37  ;;  %v1565_v34 = vmax.f32 %v1517_v22, 0.0 }
 0x24a   :  { %v1404_v60 = vmax.f32 %v5605_v61, %v1273_v38  ;;  %v1275_v43 = vpop.f32.mrb[169].mxu0 }
 0x24b   :  { %v1566_v41 = vmax.f32 %v1518_v39, 0.0  ;;  %v1405_v15 = vmax.f32 %v5606_v42, %v1275_v43  ;;  %v1277_v46 = vpop.f32.mrb[170].mxu0  ;;  %v5615_v39 = vld [vmem:[#allocation36_spill] sm:$0xff]  ;;  %v5616_v43 = vld [vmem:[#allocation37_spill] sm:$0xff] }
 0x24c   :  { %v1406_v52 = vmax.f32 %v5607_v24, %v1277_v46  ;;  %v1279_v25 = vpop.f32.mrb[171].mxu0 }
 0x24d   :  { %v5141_v6 = vpack.c.bf16 %v1566_v41, %v1565_v34  ;;  %v1464_v50 = vmax.f32 %v1404_v60, %v1405_v15  ;;  %v1407_v27 = vmax.f32 %v5608_v26, %v1279_v25  ;;  %v5617_v25 = vld [vmem:[#allocation38_spill] sm:$0xff] }
 0x24f   :  { %v1519_v16 = vadd.f32 %v4887_v8, %v1464_v50  ;;  %v1465_v3 = vmax.f32 %v1406_v52, %v1407_v27 }
 0x250   :  { %2206 = vmatmul.mubr.bf16.gmra.mrb[36].mxu1 %v4930_v13 }
 0x251   :  { %v1567_v28 = vmax.f32 %v1519_v16, 0.0  ;;  %v1520_v5 = vadd.f32 %v4887_v8, %v1465_v3  ;;  %v1283_v29 = vpop.f32.mrb[172].mxu0  ;;  %2215 = vmatprep.mubr.bf16.mxu1 %v5034_v40  ;;  %v5618_v16 = vld [vmem:[#allocation39_spill] sm:$0xff] }
 0x252   :  { %v1408_v56 = vmax.f32 %v5609_v47, %v1283_v29  ;;  %v1285_v31 = vpop.f32.mrb[173].mxu0 }
 0x253   :  { %v1568_v0 = vmax.f32 %v1520_v5, 0.0  ;;  %v1409_v4 = vmax.f32 %v5610_v1, %v1285_v31  ;;  %v1287_v51 = vpop.f32.mrb[174].mxu0  ;;  %v5619_v5 = vld [vmem:[#allocation40_spill] sm:$0xff]  ;;  %v5620_v31 = vld [vmem:[#allocation41_spill] sm:$0xff] }
 0x254   :  { %v1410_v53 = vmax.f32 %v5611_v33, %v1287_v51  ;;  %v1289_v13 = vpop.f32.mrb[175].mxu0 }
 0x255   :  { %v1466_v10 = vmax.f32 %v1408_v56, %v1409_v4  ;;  %v1411_v2 = vmax.f32 %v5612_v17, %v1289_v13  ;;  %v5155_v44 = vpack.c.bf16 %v1568_v0, %v1567_v28  ;;  %v5621_v13 = vld [vmem:[#allocation42_spill] sm:$0xff] }
 0x257   :  { %v1521_v62 = vadd.f32 %v4887_v8, %v1466_v10  ;;  %v1467_v18 = vmax.f32 %v1410_v53, %v1411_v2 }
 0x258   :  { %2216 = vmatmul.mubr.bf16.gmra.mrb[40].mxu1 %v4990_v36 }
 0x259   :  { %v1522_v12 = vadd.f32 %v4887_v8, %v1467_v18  ;;  %v1293_v30 = vpop.f32.mrb[176].mxu0  ;;  %2225 = vmatprep.mubr.bf16.mxu1 %v5054_v7  ;;  %v1569_v14 = vmax.f32 %v1521_v62, 0.0  ;;  %v5622_v62 = vld [vmem:[#allocation43_spill] sm:$0xff] }
 0x25a   :  { %v1412_v55 = vmax.f32 %v5613_v35, %v1293_v30  ;;  %v1295_v11 = vpop.f32.mrb[177].mxu0 }
 0x25b   :  { %v1570_v54 = vmax.f32 %v1522_v12, 0.0  ;;  %v1413_v22 = vmax.f32 %v5614_v57, %v1295_v11  ;;  %v1297_v59 = vpop.f32.mrb[178].mxu0  ;;  %v5623_v12 = vld [vmem:[#allocation44_spill] sm:$0xff] }
 0x25c   :  { %v1414_v38 = vmax.f32 %v5615_v39, %v1297_v59  ;;  %v1299_v61 = vpop.f32.mrb[179].mxu0 }
 0x25d   :  { %v1468_v60 = vmax.f32 %v1412_v55, %v1413_v22  ;;  %v1415_v34 = vmax.f32 %v5616_v43, %v1299_v61  ;;  %v5168_v41 = vpack.c.bf16 %v1570_v54, %v1569_v14  ;;  %v5624_v55 = vld [vmem:[#allocation45_spill] sm:$0xff] }
 0x25f   :  { %v1523_v42 = vadd.f32 %v4887_v8, %v1468_v60  ;;  %v1469_v15 = vmax.f32 %v1414_v38, %v1415_v34  ;;  %v5625_v38 = vld [vmem:[#allocation46_spill] sm:$0xff] }
 0x260   :  { %2226 = vmatmul.mubr.bf16.gmra.mrb[44].mxu1 %v5012_v19 }
 0x261   :  { %v1524_v46 = vadd.f32 %v4887_v8, %v1469_v15  ;;  %v1303_v24 = vpop.f32.mrb[180].mxu0  ;;  %2235 = vmatprep.mubr.bf16.mxu1 %v5094_v9  ;;  %v1571_v52 = vmax.f32 %v1523_v42, 0.0  ;;  %v5626_v42 = vld [vmem:[#allocation47_spill] sm:$0xff] }
 0x262   :  { %v1416_v50 = vmax.f32 %v5617_v25, %v1303_v24  ;;  %v1305_v26 = vpop.f32.mrb[181].mxu0  ;;  %v5627_v24 = vld [vmem:[#allocation48_spill] sm:$0xff] }
 0x263   :  { %v1572_v27 = vmax.f32 %v1524_v46, 0.0  ;;  %v1417_v3 = vmax.f32 %v5618_v16, %v1305_v26  ;;  %v1307_v28 = vpop.f32.mrb[182].mxu0  ;;  %v5628_v26 = vld [vmem:[#allocation49_spill] sm:$0xff] }
 0x264   :  { %v1418_v29 = vmax.f32 %v5619_v5, %v1307_v28  ;;  %v1309_v47 = vpop.f32.mrb[183].mxu0 }
 0x265   :  { %v1470_v56 = vmax.f32 %v1416_v50, %v1417_v3  ;;  %v1419_v58 = vmax.f32 %v5620_v31, %v1309_v47  ;;  %v5178_v0 = vpack.c.bf16 %v1572_v27, %v1571_v52  ;;  %v4095_v31 = vld [vmem:[%s5527_s5 + $0x48] sm:$0xff]  }
 0x266   :  { %3589 = vmatprep.subr.bf16.mxu0 %v4095_v31 }
 0x267   :  { %v1525_v1 = vadd.f32 %v4887_v8, %v1470_v56  ;;  %v1471_v4 = vmax.f32 %v1418_v29, %v1419_v58  ;;  %v4069_v58 = vld [vmem:[%s5525_s3 + $0x200] ss:$8 sps:$4 sm:$0xff]  }
 0x268   :  { %2236 = vmatmul.mubr.bf16.gmra.mrb[48].mxu1 %v5074_v45 }
 0x269   :  { %v1526_v51 = vadd.f32 %v4887_v8, %v1471_v4  ;;  %v1313_v33 = vpop.f32.mrb[184].mxu0  ;;  %2245 = vmatprep.mubr.bf16.mxu1 %v5102_v21  ;;  %v1573_v53 = vmax.f32 %v1525_v1, 0.0  ;;  %v4074_v1 = vld [vmem:[%s5525_s3 + $0x214] ss:$8 sps:$4 sm:$0xff]   ;;  %v4096_v4 = vld [vmem:[%s5527_s5 + $0x8] sm:$0xff]  }
 0x26a   :  { %v1420_v10 = vmax.f32 %v5621_v13, %v1313_v33  ;;  %v1315_v17 = vpop.f32.mrb[185].mxu0  ;;  %v4077_v33 = vld [vmem:[%s5525_s3 + $0x224] ss:$8 sps:$4 sm:$0xff]   ;;  %3590 = vmatpush3.bf16.msra.mxu0 %v4096_v4  ;;  %v4078_v13 = vld [vmem:[%s5525_s3 + $0x230] ss:$8 sps:$4 sm:$0xff]  }
 0x26b   :  { %v1574_v2 = vmax.f32 %v1526_v51, 0.0  ;;  %v1421_v18 = vmax.f32 %v5622_v62, %v1315_v17  ;;  %v1317_v20 = vpop.f32.mrb[186].mxu0  ;;  %v4072_v51 = vld [vmem:[%s5525_s3 + $0x210] ss:$8 sps:$4 sm:$0xff]   ;;  %v4081_v17 = vld [vmem:[%s5525_s3 + $0x240] ss:$8 sps:$4 sm:$0xff]  }
 0x26c   :  { %v1422_v30 = vmax.f32 %v5623_v12, %v1317_v20  ;;  %v1319_v14 = vpop.f32.mrb[187].mxu0  ;;  %v4091_v62 = vld [vmem:[%s5525_s3 + $0x264] ss:$8 sps:$4 sm:$0xff]   ;;  %v4094_v20 = vld [vmem:[%s5525_s3 + $0x274] ss:$8 sps:$4 sm:$0xff]  }
 0x26d   :  { %v1472_v35 = vmax.f32 %v1420_v10, %v1421_v18  ;;  %v1423_v11 = vmax.f32 %v5624_v55, %v1319_v14  ;;  %v5188_v54 = vpack.c.bf16 %v1574_v2, %v1573_v53  ;;  %v4080_v53 = vld [vmem:[%s5525_s3 + $0x234] ss:$8 sps:$4 sm:$0xff]   ;;  %v4083_v10 = vld [vmem:[%s5525_s3 + $0x244] ss:$8 sps:$4 sm:$0xff]   ;;  %v4084_v2 = vld [vmem:[%s5525_s3 + $0x250] ss:$8 sps:$4 sm:$0xff]  }
 0x26e   :  { %v4089_v18 = vld [vmem:[%s5525_s3 + $0x260] ss:$8 sps:$4 sm:$0xff]   ;;  %v4092_v12 = vld [vmem:[%s5525_s3 + $0x270] ss:$8 sps:$4 sm:$0xff]  }
 0x26f   :  { %v1527_v57 = vadd.f32 %v4887_v8, %v1472_v35  ;;  %v1473_v22 = vmax.f32 %v1422_v30, %v1423_v11  ;;  %v4097_v30 = vld [vmem:[%s5527_s5 + $0x50] sm:$0xff]   ;;  %v4099_v35 = vld [vmem:[%s5527_s5 + $0x58] sm:$0xff]   ;;  %v4102_v55 = vld [vmem:[%s5527_s5 + $0x20] sm:$0xff]  }
 0x270   :  { %2246 = vmatmul.mubr.bf16.gmra.mrb[52].mxu1 %v5084_v63  ;;  %3591 = vmatprep.subr.bf16.mxu0 %v4097_v30  ;;  %v4098_v14 = vld [vmem:[%s5527_s5 + $0x10] sm:$0xff]   ;;  %v4103_v11 = vld [vmem:[%s5527_s5 + $0x68] sm:$0xff]  }
 0x271   :  { %v1528_v59 = vadd.f32 %v4887_v8, %v1473_v22  ;;  %v1323_v39 = vpop.f32.mrb[188].mxu0  ;;  %2255 = vmatprep.mubr.bf16.mxu1 %v5131_v32  ;;  %v1575_v43 = vmax.f32 %v1527_v57, 0.0  ;;  %v4149_v8 = vld [vmem:[%s5526_s2] ss:$0 sm:$0xff]  ;;  %3592 = vmatpush3.bf16.msra.mxu0 %v4098_v14  ;;  %v4150_v57 = vmov 0  }
 0x272   :  { %v1424_v61 = vmax.f32 %v5625_v38, %v1323_v39  ;;  %v1325_v60 = vpop.f32.mrb[189].mxu0  ;;  %3593 = vmatprep.subr.bf16.mxu0 %v4099_v35  ;;  %v4105_v22 = vld [vmem:[%s5527_s5 + $0xc0] sm:$0xff]   ;;  %v4121_v38 = vld [vmem:[%s5527_s5 + $0xf0] sm:$0xff]  }
 0x273   :  { %v1576_v34 = vmax.f32 %v1528_v59, 0.0  ;;  %v1425_v15 = vmax.f32 %v5626_v42, %v1325_v60  ;;  %v1327_v46 = vpop.f32.mrb[190].mxu0  ;;  %v4104_v59 = vld [vmem:[%s5527_s5 + $0x28] sm:$0xff]   ;;  %v4106_v39 = vld [vmem:[%s5527_s5 + $0x80] sm:$0xff]   ;;  %v4123_v60 = vld [vmem:[%s5527_s5 + $0xf8] sm:$0xff]  }
 0x274   :  { %v1426_v52 = vmax.f32 %v5627_v24, %v1327_v46  ;;  %v1329_v25 = vpop.f32.mrb[191].mxu0  ;;  %v5440_v35 = vld [vmem:[%s5528_s4] ss:$0 sm:$0xff] }
 0x275   :  { %v1474_v50 = vmax.f32 %v1424_v61, %v1425_v15  ;;  %v1427_v27 = vmax.f32 %v5628_v26, %v1329_v25  ;;  %v5198_v16 = vpack.c.bf16 %v1576_v34, %v1575_v43  ;;  %v4122_v61 = vld [vmem:[%s5527_s5 + $0xb0] sm:$0xff]   ;;  %v4124_v43 = vld [vmem:[%s5527_s5 + $0xb8] sm:$0xff]  }
 0x277   :  { %v1529_v3 = vadd.f32 %v4149_v8, %v1474_v50  ;;  %v1475_v28 = vmax.f32 %v1426_v52, %v1427_v27 }
 0x278   :  { %2256 = vmatmul.mubr.bf16.gmra.mrb[56].mxu1 %v5110_v23 }
 0x279   :  { %v1530_v5 = vadd.f32 %v4149_v8, %v1475_v28  ;;  %2265 = vmatprep.mubr.bf16.mxu1 %v5141_v6  ;;  %v1577_v29 = vmax.f32 %v1529_v3, 0.0 }
 0x27b   :  { %v1578_v47 = vmax.f32 %v1530_v5, 0.0 }
 0x27d   :  { %v5205_v56 = vpack.c.bf16 %v1578_v47, %v1577_v29 }
 0x280   :  { %2266 = vmatmul.mubr.bf16.gmra.mrb[60].mxu1 %v5120_v49 }
 0x281   :  { %2308 = vmatprep.mubr.bf16.mxu1 %v4990_v36 }
 0x288   :  { %2309 = vmatmul.mubr.bf16.vlgmr.msra.gmra.mrb[0].mxu1 %v4951_v48  ;;  %v4075_v48 = vld [vmem:[%s5525_s3 + $0x220] ss:$8 sps:$4 sm:$0xff]  }
 0x289   :  { %2470 = vmatpush1.bf16.msra.mxu1 %v4069_v58  ;;  %2318 = vmatprep.mubr.bf16.mxu1 %v5012_v19 }
 0x28a   :  { %2471 = vmatprep.subr.bf16.mxu1 %v4074_v1 }
 0x28d   :  { %2472 = vmatpush1.bf16.msra.mxu1 %v4072_v51 }
 0x28e   :  { %2473 = vmatprep.subr.bf16.mxu1 %v4077_v33 }
 0x290   :  { %2319 = vmatmul.mubr.bf16.gmra.mrb[4].mxu1 %v4971_v37  ;;  %v4086_v37 = vld [vmem:[%s5525_s3 + $0x254] ss:$8 sps:$4 sm:$0xff]  }
 0x291   :  { %2328 = vmatprep.mubr.bf16.mxu1 %v5074_v45  ;;  %2474 = vmatpush1.bf16.msra.mxu1 %v4075_v48 }
 0x292   :  { %2475 = vmatprep.subr.bf16.mxu1 %v4080_v53 }
 0x295   :  { %2476 = vmatpush1.bf16.msra.mxu1 %v4078_v13 }
 0x296   :  { %2477 = vmatprep.subr.bf16.mxu1 %v4083_v10 }
 0x298   :  { %2329 = vmatmul.mubr.bf16.gmra.mrb[8].mxu1 %v5034_v40 }
 0x299   :  { %2338 = vmatprep.mubr.bf16.mxu1 %v5084_v63  ;;  %2478 = vmatpush1.bf16.msra.mxu1 %v4081_v17 }
 0x29a   :  { %2479 = vmatprep.subr.bf16.mxu1 %v4086_v37 }
 0x29d   :  { %2480 = vmatpush1.bf16.msra.mxu1 %v4084_v2 }
 0x29e   :  { %2481 = vmatprep.subr.bf16.mxu1 %v4091_v62 }
 0x2a0   :  { %2339 = vmatmul.mubr.bf16.gmra.mrb[12].mxu1 %v5054_v7 }
 0x2a1   :  { %2348 = vmatprep.mubr.bf16.mxu1 %v5110_v23  ;;  %2482 = vmatpush1.bf16.msra.mxu1 %v4089_v18 }
 0x2a2   :  { %2483 = vmatprep.subr.bf16.mxu1 %v4094_v20 }
 0x2a5   :  { %2484 = vmatpush1.bf16.msra.mxu1 %v4092_v12 }
 0x2a6   :  { %3615 = vmatprep.subr.bf16.mxu1 %v4105_v22 }
 0x2a8   :  { %2349 = vmatmul.mubr.bf16.gmra.mrb[16].mxu1 %v5094_v9 }
 0x2a9   :  { %2358 = vmatprep.mubr.bf16.mxu1 %v5120_v49 }
 0x2b0   :  { %2359 = vmatmul.mubr.bf16.gmra.mrb[20].mxu1 %v5102_v21 }
 0x2b1   :  { %2368 = vmatprep.mubr.bf16.mxu1 %v5155_v44 }
 0x2b8   :  { %2369 = vmatmul.mubr.bf16.gmra.mrb[24].mxu1 %v5131_v32 }
 0x2b9   :  { %2378 = vmatprep.mubr.bf16.mxu1 %v5168_v41 }
 0x2c0   :  { %2379 = vmatmul.mubr.bf16.gmra.mrb[28].mxu1 %v5141_v6 }
 0x2c1   :  { %2388 = vmatprep.mubr.bf16.mxu1 %v5034_v40 }
 0x2c8   :  { %2389 = vmatmul.mubr.bf16.gmra.mrb[32].mxu1 %v4990_v36  ;;  %v4100_v36 = vld [vmem:[%s5527_s5 + $0x18] sm:$0xff]  }
 0x2c9   :  { %2398 = vmatprep.mubr.bf16.mxu1 %v5054_v7  ;;  %3594 = vmatpush3.bf16.msra.mxu0 %v4100_v36 }
 0x2d0   :  { %2399 = vmatmul.mubr.bf16.gmra.mrb[36].mxu1 %v5012_v19  ;;  %v4101_v19 = vld [vmem:[%s5527_s5 + $0x60] sm:$0xff]  }
 0x2d1   :  { %2408 = vmatprep.mubr.bf16.mxu1 %v5094_v9  ;;  %3595 = vmatprep.subr.bf16.mxu0 %v4101_v19 }
 0x2d2   :  { %3596 = vmatpush3.bf16.msra.mxu0 %v4102_v55 }
 0x2d3   :  { %3597 = vmatprep.subr.bf16.mxu0 %v4103_v11 }
 0x2d6   :  { %3598 = vmatpush3.bf16.msra.mxu0 %v4104_v59 }
 0x2d8   :  { %2409 = vmatmul.mubr.bf16.gmra.mrb[40].mxu1 %v5074_v45 }
 0x2d9   :  { %2418 = vmatprep.mubr.bf16.mxu1 %v5102_v21 }
 0x2e0   :  { %2419 = vmatmul.mubr.bf16.gmra.mrb[44].mxu1 %v5084_v63 }
 0x2e1   :  { %2428 = vmatprep.mubr.bf16.mxu1 %v5131_v32 }
 0x2e8   :  { %2429 = vmatmul.mubr.bf16.gmra.mrb[48].mxu1 %v5110_v23 }
 0x2e9   :  { %2438 = vmatprep.mubr.bf16.mxu1 %v5141_v6 }
 0x2f0   :  { %2439 = vmatmul.mubr.bf16.gmra.mrb[52].mxu1 %v5120_v49 }
 0x2f1   :  { %2448 = vmatprep.mubr.bf16.mxu1 %v5178_v0 }
 0x2f8   :  { %2449 = vmatmul.mubr.bf16.gmra.mrb[56].mxu1 %v5155_v44 }
 0x2f9   :  { %2458 = vmatprep.mubr.bf16.mxu1 %v5188_v54 }
 0x300   :  { %2459 = vmatmul.mubr.bf16.gmra.mrb[60].mxu1 %v5168_v41 }
 0x301   :  { %2501 = vmatprep.mubr.bf16.mxu1 %v4150_v57 }
 0x308   :  { %2502 = vmatmul.mubr.bf16.vlgmr.msra.gmra.mrb[0].mxu1 %v5034_v40  ;;  %v4107_v40 = vld [vmem:[%s5527_s5 + $0xc8] sm:$0xff]  }
 0x309   :  { %2511 = vmatprep.mubr.bf16.mxu1 %v4150_v57  ;;  %3616 = vmatpush3.bf16.msra.mxu1 %v4106_v39 }
 0x30a   :  { %3617 = vmatprep.subr.bf16.mxu1 %v4107_v40 }
 0x310   :  { %2512 = vmatmul.mubr.bf16.gmra.mrb[4].mxu1 %v5054_v7  ;;  %v4108_v7 = vld [vmem:[%s5527_s5 + $0x88] sm:$0xff]  }
 0x311   :  { %2521 = vmatprep.mubr.bf16.mxu1 %v4150_v57  ;;  %3618 = vmatpush3.bf16.msra.mxu1 %v4108_v7 }
 0x318   :  { %2522 = vmatmul.mubr.bf16.gmra.mrb[8].mxu1 %v5094_v9  ;;  %v4111_v9 = vld [vmem:[%s5527_s5 + $0xd0] sm:$0xff]  }
 0x319   :  { %2531 = vmatprep.mubr.bf16.mxu1 %v4150_v57  ;;  %3619 = vmatprep.subr.bf16.mxu1 %v4111_v9 }
 0x320   :  { %2532 = vmatmul.mubr.bf16.gmra.mrb[12].mxu1 %v5102_v21  ;;  %v4112_v21 = vld [vmem:[%s5527_s5 + $0x90] sm:$0xff]  }
 0x321   :  { %2541 = vmatprep.mubr.bf16.mxu1 %v4150_v57  ;;  %3620 = vmatpush3.bf16.msra.mxu1 %v4112_v21 }
 0x328   :  { %2542 = vmatmul.mubr.bf16.gmra.mrb[16].mxu1 %v5131_v32  ;;  %v4115_v32 = vld [vmem:[%s5527_s5 + $0xe0] sm:$0xff]  }
 0x329   :  { %2551 = vmatprep.mubr.bf16.mxu1 %v4150_v57 }
 0x330   :  { %2552 = vmatmul.mubr.bf16.gmra.mrb[20].mxu1 %v5141_v6  ;;  %v4116_v6 = vld [vmem:[%s5527_s5 + $0xa0] sm:$0xff]  }
 0x331   :  { %2561 = vmatprep.mubr.bf16.mxu1 %v4150_v57 }
 0x338   :  { %2562 = vmatmul.mubr.bf16.gmra.mrb[24].mxu1 %v5178_v0  ;;  %v4119_v0 = vld [vmem:[%s5527_s5 + $0xe8] sm:$0xff]  }
 0x339   :  { %2571 = vmatprep.mubr.bf16.mxu1 %v4150_v57 }
 0x340   :  { %2572 = vmatmul.mubr.bf16.gmra.mrb[28].mxu1 %v5188_v54  ;;  %v4120_v54 = vld [vmem:[%s5527_s5 + $0xa8] sm:$0xff]  }
 0x341   :  { %2581 = vmatprep.mubr.bf16.mxu1 %v4150_v57 }
 0x348   :  { %2582 = vmatmul.mubr.bf16.gmra.mrb[32].mxu1 %v5074_v45  ;;  %v4109_v45 = vld [vmem:[%s5527_s5 + $0x70] sm:$0xff]  }
 0x349   :  { %2591 = vmatprep.mubr.bf16.mxu1 %v4150_v57  ;;  %3599 = vmatprep.subr.bf16.mxu0 %v4109_v45 }
 0x350   :  { %2592 = vmatmul.mubr.bf16.gmra.mrb[36].mxu1 %v5084_v63  ;;  %v4110_v63 = vld [vmem:[%s5527_s5 + $0x30] sm:$0xff]  }
 0x351   :  { %2601 = vmatprep.mubr.bf16.mxu1 %v4150_v57  ;;  %3600 = vmatpush3.bf16.msra.mxu0 %v4110_v63 }
 0x358   :  { %2602 = vmatmul.mubr.bf16.gmra.mrb[40].mxu1 %v5110_v23  ;;  %v4113_v23 = vld [vmem:[%s5527_s5 + $0xd8] sm:$0xff]  }
 0x359   :  { %2611 = vmatprep.mubr.bf16.mxu1 %v4150_v57  ;;  %3621 = vmatprep.subr.bf16.mxu1 %v4113_v23 }
 0x360   :  { %2612 = vmatmul.mubr.bf16.gmra.mrb[44].mxu1 %v5120_v49  ;;  %v4114_v49 = vld [vmem:[%s5527_s5 + $0x98] sm:$0xff]  }
 0x361   :  { %2621 = vmatprep.mubr.bf16.mxu1 %v4150_v57  ;;  %3622 = vmatpush3.bf16.msra.mxu1 %v4114_v49 }
 0x362   :  { %3623 = vmatprep.subr.bf16.mxu1 %v4115_v32 }
 0x365   :  { %3624 = vmatpush3.bf16.msra.mxu1 %v4116_v6 }
 0x366   :  { %3625 = vmatprep.subr.bf16.mxu1 %v4119_v0 }
 0x368   :  { %2622 = vmatmul.mubr.bf16.gmra.mrb[48].mxu1 %v5155_v44  ;;  %v4117_v44 = vld [vmem:[%s5527_s5 + $0x78] sm:$0xff]  }
 0x369   :  { %2631 = vmatprep.mubr.bf16.mxu1 %v4150_v57  ;;  %3601 = vmatprep.subr.bf16.mxu0 %v4117_v44 }
 0x36a   :  { %3626 = vmatpush3.bf16.msra.mxu1 %v4120_v54 }
 0x36b   :  { %3627 = vmatprep.subr.bf16.mxu1 %v4121_v38 }
 0x36e   :  { %3628 = vmatpush3.bf16.msra.mxu1 %v4122_v61 }
 0x36f   :  { %3629 = vmatprep.subr.bf16.mxu1 %v4123_v60 }
 0x370   :  { %2632 = vmatmul.mubr.bf16.gmra.mrb[52].mxu1 %v5168_v41  ;;  %v4118_v41 = vld [vmem:[%s5527_s5 + $0x38] sm:$0xff]  }
 0x371   :  { %2641 = vmatprep.mubr.bf16.mxu1 %v4150_v57  ;;  %3602 = vmatpush3.bf16.msra.mxu0 %v4118_v41 }
 0x372   :  { %3630 = vmatpush3.bf16.msra.mxu1 %v4124_v43 }
 0x378   :  { %2642 = vmatmul.mubr.bf16.gmra.mrb[56].mxu1 %v5198_v16 }
 0x379   :  { %2651 = vmatprep.mubr.bf16.mxu1 %v4150_v57 }
 0x380   :  { %2652 = vmatmul.mubr.bf16.gmra.mrb[60].mxu1 %v5205_v56 }
 0x3db   :  { %v2503_v34 = vpop.f32.mrb[0].mxu1 }
 0x3dc   :  { %v2505_v42 = vpop.f32.mrb[1].mxu1 }
 0x3dd   :  { %v2507_v15 = vpop.f32.mrb[2].mxu1 }
 0x3de   :  { %v2509_v46 = vpop.f32.mrb[3].mxu1 }
 0x3e3   :  { %v2513_v24 = vpop.f32.mrb[4].mxu1 }
 0x3e4   :  { %v2515_v52 = vpop.f32.mrb[5].mxu1 }
 0x3e5   :  { %v2517_v25 = vpop.f32.mrb[6].mxu1 }
 0x3e6   :  { %v2519_v50 = vpop.f32.mrb[7].mxu1 }
 0x3eb   :  { %v5391_v26 = vpop.f32.mrb[8].mxu1 }
 0x3ec   :  { %v2525_v27 = vpop.f32.mrb[9].mxu1 }
 0x3ed   :  { %v5393_v16 = vpop.f32.mrb[10].mxu1 }
 0x3ee   :  { %v5395_v8 = vpop.f32.mrb[11].mxu1 }
 0x3f3   :  { %v5397_v3 = vpop.f32.mrb[12].mxu1 }
 0x3f4   :  { %v5399_v28 = vpop.f32.mrb[13].mxu1 }
 0x3f5   :  { %v5401_v5 = vpop.f32.mrb[14].mxu1 }
 0x3f6   :  { %v5403_v29 = vpop.f32.mrb[15].mxu1 }
 0x3fb   :  { %v5405_v47 = vpop.f32.mrb[16].mxu1 }
 0x3fc   :  { %v5407_v56 = vpop.f32.mrb[17].mxu1 }
 0x3fd   :  { %v5409_v31 = vpop.f32.mrb[18].mxu1 }
 0x3fe   :  { %v5411_v58 = vpop.f32.mrb[19].mxu1 }
 0x403   :  { %v5413_v1 = vpop.f32.mrb[20].mxu1 }
 0x404   :  { %v5415_v4 = vpop.f32.mrb[21].mxu1 }
 0x405   :  { %v5417_v51 = vpop.f32.mrb[22].mxu1 }
 0x406   :  { %v5419_v33 = vpop.f32.mrb[23].mxu1 }
 0x40b   :  { %v5421_v48 = vpop.f32.mrb[24].mxu1 }
 0x40c   :  { %v5423_v53 = vpop.f32.mrb[25].mxu1 }
 0x40d   :  { %v5425_v13 = vpop.f32.mrb[26].mxu1 }
 0x40e   :  { %v5427_v10 = vpop.f32.mrb[27].mxu1 }
 0x413   :  { %v5429_v17 = vpop.f32.mrb[28].mxu1 }
 0x414   :  { %v5431_v37 = vpop.f32.mrb[29].mxu1 }
 0x415   :  { %v5433_v2 = vpop.f32.mrb[30].mxu1 }
 0x416   :  { %v5435_v62 = vpop.f32.mrb[31].mxu1 }
 0x41b   :  { %v2583_v18 = vpop.f32.mrb[32].mxu1 }
 0x41c   :  { %v2662_v20 = vmax.f32 %v2503_v34, %v2583_v18  ;;  %v2585_v12 = vpop.f32.mrb[33].mxu1 }
 0x41d   :  { %v2663_v30 = vmax.f32 %v2505_v42, %v2585_v12  ;;  %v2587_v14 = vpop.f32.mrb[34].mxu1 }
 0x41e   :  { %v2664_v36 = vmax.f32 %v2507_v15, %v2587_v14  ;;  %v2589_v19 = vpop.f32.mrb[35].mxu1 }
 0x41f   :  { %v2694_v55 = vmax.f32 %v2662_v20, %v2663_v30  ;;  %v2665_v11 = vmax.f32 %v2509_v46, %v2589_v19 }
 0x421   :  { %v2717_v57 = vadd.f32 %v5440_v35, %v2694_v55  ;;  %v2695_v22 = vmax.f32 %v2664_v36, %v2665_v11 }
 0x423   :  { %v2718_v59 = vadd.f32 %v5440_v35, %v2695_v22  ;;  %v2593_v39 = vpop.f32.mrb[36].mxu1  ;;  %v2733_v45 = vmax.f32 %v2717_v57, 0.0 }
 0x424   :  { %v2666_v40 = vmax.f32 %v2513_v24, %v2593_v39  ;;  %v2595_v7 = vpop.f32.mrb[37].mxu1 }
 0x425   :  { %v2734_v63 = vmax.f32 %v2718_v59, 0.0  ;;  %v2667_v9 = vmax.f32 %v2515_v52, %v2595_v7  ;;  %v2597_v21 = vpop.f32.mrb[38].mxu1 }
 0x426   :  { %v2668_v23 = vmax.f32 %v2517_v25, %v2597_v21  ;;  %v2599_v49 = vpop.f32.mrb[39].mxu1 }
 0x427   :  { %v2749_v32 = vpack.c.bf16 %v2734_v63, %v2733_v45  ;;  %v2696_v6 = vmax.f32 %v2666_v40, %v2667_v9  ;;  %v2669_v44 = vmax.f32 %v2519_v50, %v2599_v49 }
 0x429   :  { %v2719_v41 = vadd.f32 %v5440_v35, %v2696_v6  ;;  %v2697_v0 = vmax.f32 %v2668_v23, %v2669_v44 }
 0x42b   :  { %v2720_v54 = vadd.f32 %v5440_v35, %v2697_v0  ;;  %v2603_v38 = vpop.f32.mrb[40].mxu1  ;;  %v2735_v43 = vmax.f32 %v2719_v41, 0.0 }
 0x42c   :  { %v2670_v61 = vmax.f32 %v5391_v26, %v2603_v38  ;;  %v2605_v60 = vpop.f32.mrb[41].mxu1 }
 0x42d   :  { %v2736_v34 = vmax.f32 %v2720_v54, 0.0  ;;  %v2671_v42 = vmax.f32 %v2525_v27, %v2605_v60  ;;  %v2607_v15 = vpop.f32.mrb[42].mxu1 }
 0x42e   :  { %v2672_v46 = vmax.f32 %v5393_v16, %v2607_v15  ;;  %v2609_v24 = vpop.f32.mrb[43].mxu1 }
 0x42f   :  { %v2698_v52 = vmax.f32 %v2670_v61, %v2671_v42  ;;  %v2673_v25 = vmax.f32 %v5395_v8, %v2609_v24  ;;  %v2753_v50 = vpack.c.bf16 %v2736_v34, %v2735_v43 }
 0x431   :  { %v2721_v18 = vadd.f32 %v5440_v35, %v2698_v52  ;;  %v2699_v20 = vmax.f32 %v2672_v46, %v2673_v25 }
 0x433   :  { %v2722_v12 = vadd.f32 %v5440_v35, %v2699_v20  ;;  %v2613_v30 = vpop.f32.mrb[44].mxu1  ;;  %v2737_v36 = vmax.f32 %v2721_v18, 0.0 }
 0x434   :  { %v2674_v26 = vmax.f32 %v5397_v3, %v2613_v30  ;;  %v2615_v14 = vpop.f32.mrb[45].mxu1 }
 0x435   :  { %v2738_v19 = vmax.f32 %v2722_v12, 0.0  ;;  %v2675_v27 = vmax.f32 %v5399_v28, %v2615_v14  ;;  %v2617_v55 = vpop.f32.mrb[46].mxu1 }
 0x436   :  { %v2676_v16 = vmax.f32 %v5401_v5, %v2617_v55  ;;  %v2619_v11 = vpop.f32.mrb[47].mxu1 }
 0x437   :  { %v2700_v57 = vmax.f32 %v2674_v26, %v2675_v27  ;;  %v2677_v8 = vmax.f32 %v5403_v29, %v2619_v11  ;;  %v2750_v22 = vpack.c.bf16 %v2738_v19, %v2737_v36 }
 0x439   :  { %v2723_v59 = vadd.f32 %v5440_v35, %v2700_v57  ;;  %v2701_v39 = vmax.f32 %v2676_v16, %v2677_v8  ;;  %3052 = vmatprep.mubr.bf16.mxu0 %v2750_v22 }
 0x43a   :  { %3053 = vmatmul.mubr.bf16.vlgmr.msra.gmra.mrb[192].mxu0 %v2749_v32 }
 0x43b   :  { %v2724_v3 = vadd.f32 %v5440_v35, %v2701_v39  ;;  %v2623_v40 = vpop.f32.mrb[48].mxu1  ;;  %v2739_v28 = vmax.f32 %v2723_v59, 0.0 }
 0x43c   :  { %v2678_v7 = vmax.f32 %v5405_v47, %v2623_v40  ;;  %v2625_v45 = vpop.f32.mrb[49].mxu1 }
 0x43d   :  { %v2740_v63 = vmax.f32 %v2724_v3, 0.0  ;;  %v2679_v5 = vmax.f32 %v5407_v56, %v2625_v45  ;;  %v2627_v9 = vpop.f32.mrb[50].mxu1 }
 0x43e   :  { %v2680_v21 = vmax.f32 %v5409_v31, %v2627_v9  ;;  %v2629_v29 = vpop.f32.mrb[51].mxu1  ;;  %v4132_v9 = vld [vmem:[%s5529_s7 + $0x38] sm:$0xff]  }
 0x43f   :  { %v2702_v23 = vmax.f32 %v2678_v7, %v2679_v5  ;;  %v2681_v49 = vmax.f32 %v5411_v58, %v2629_v29  ;;  %v2754_v6 = vpack.c.bf16 %v2740_v63, %v2739_v28  ;;  %v4129_v28 = vld [vmem:[%s5529_s7 + $0x20] sm:$0xff]   ;;  %v4130_v63 = vld [vmem:[%s5529_s7 + $0x28] sm:$0xff]   ;;  %v4131_v5 = vld [vmem:[%s5529_s7 + $0x30] sm:$0xff]  }
 0x441   :  { %v2725_v32 = vadd.f32 %v5440_v35, %v2702_v23  ;;  %v2703_v44 = vmax.f32 %v2680_v21, %v2681_v49  ;;  %3060 = vmatprep.mubr.bf16.mxu0 %v2754_v6 }
 0x442   :  { %3061 = vmatmul.mubr.bf16.gmra.mrb[196].mxu0 %v2753_v50 }
 0x443   :  { %v2726_v47 = vadd.f32 %v5440_v35, %v2703_v44  ;;  %v2633_v41 = vpop.f32.mrb[52].mxu1  ;;  %v2741_v56 = vmax.f32 %v2725_v32, 0.0 }
 0x444   :  { %v2682_v0 = vmax.f32 %v5413_v1, %v2633_v41  ;;  %v2635_v54 = vpop.f32.mrb[53].mxu1 }
 0x445   :  { %v2742_v38 = vmax.f32 %v2726_v47, 0.0  ;;  %v2683_v31 = vmax.f32 %v5415_v4, %v2635_v54  ;;  %v2637_v61 = vpop.f32.mrb[54].mxu1 }
 0x446   :  { %v2684_v60 = vmax.f32 %v5417_v51, %v2637_v61  ;;  %v2639_v58 = vpop.f32.mrb[55].mxu1 }
 0x447   :  { %v2751_v43 = vpack.c.bf16 %v2742_v38, %v2741_v56  ;;  %v2704_v34 = vmax.f32 %v2682_v0, %v2683_v31  ;;  %v2685_v42 = vmax.f32 %v5419_v33, %v2639_v58  ;;  %v3545_v38 = vld [vmem:[%s5530_s6] ss:$0 sm:$0xff] }
 0x449   :  { %v2727_v15 = vadd.f32 %v5440_v35, %v2704_v34  ;;  %v2705_v46 = vmax.f32 %v2684_v60, %v2685_v42 }
 0x44b   :  { %v2728_v24 = vadd.f32 %v5440_v35, %v2705_v46  ;;  %v2643_v52 = vpop.f32.mrb[56].mxu1  ;;  %v2743_v50 = vmax.f32 %v2727_v15, 0.0 }
 0x44c   :  { %v2686_v1 = vmax.f32 %v5421_v48, %v2643_v52  ;;  %v2645_v25 = vpop.f32.mrb[57].mxu1 }
 0x44d   :  { %v2744_v18 = vmax.f32 %v2728_v24, 0.0  ;;  %v2687_v4 = vmax.f32 %v5423_v53, %v2645_v25  ;;  %v2647_v20 = vpop.f32.mrb[58].mxu1 }
 0x44e   :  { %v2688_v51 = vmax.f32 %v5425_v13, %v2647_v20  ;;  %v2649_v12 = vpop.f32.mrb[59].mxu1 }
 0x44f   :  { %v2706_v30 = vmax.f32 %v2686_v1, %v2687_v4  ;;  %v2689_v33 = vmax.f32 %v5427_v10, %v2649_v12  ;;  %v2755_v26 = vpack.c.bf16 %v2744_v18, %v2743_v50 }
 0x451   :  { %v2729_v14 = vadd.f32 %v5440_v35, %v2706_v30  ;;  %v2707_v36 = vmax.f32 %v2688_v51, %v2689_v33 }
 0x453   :  { %v2730_v19 = vadd.f32 %v5440_v35, %v2707_v36  ;;  %v2653_v27 = vpop.f32.mrb[60].mxu1  ;;  %v2745_v16 = vmax.f32 %v2729_v14, 0.0 }
 0x454   :  { %v2690_v48 = vmax.f32 %v5429_v17, %v2653_v27  ;;  %v2655_v55 = vpop.f32.mrb[61].mxu1 }
 0x455   :  { %v2746_v11 = vmax.f32 %v2730_v19, 0.0  ;;  %v2691_v53 = vmax.f32 %v5431_v37, %v2655_v55  ;;  %v2657_v57 = vpop.f32.mrb[62].mxu1  ;;  %v4125_v37 = vld [vmem:[%s5529_s7] sm:$0xff]  }
 0x456   :  { %v2692_v13 = vmax.f32 %v5433_v2, %v2657_v57  ;;  %v2659_v8 = vpop.f32.mrb[63].mxu1  ;;  %v4126_v2 = vld [vmem:[%s5529_s7 + $0x8] sm:$0xff]   ;;  %3653 = vmatprep.subr.bf16.mxu0 %v4125_v37 }
 0x457   :  { %v2708_v22 = vmax.f32 %v2690_v48, %v2691_v53  ;;  %v2693_v10 = vmax.f32 %v5435_v62, %v2659_v8  ;;  %v2752_v59 = vpack.c.bf16 %v2746_v11, %v2745_v16  ;;  %v4127_v62 = vld [vmem:[%s5529_s7 + $0x10] sm:$0xff]   ;;  %3654 = vmatpush3.bf16.msra.mxu0 %v4125_v37  ;;  %v3578_v48 = vld [vmem:[%s5531_s8] ss:$0 sm:$0xff] }
 0x458   :  { %3655 = vmatprep.subr.bf16.mxu0 %v4126_v2 }
 0x459   :  { %v2731_v39 = vadd.f32 %v5440_v35, %v2708_v22  ;;  %v2709_v3 = vmax.f32 %v2692_v13, %v2693_v10  ;;  %3101 = vmatprep.mubr.bf16.mxu1 %v2752_v59 }
 0x45a   :  { %3102 = vmatmul.mubr.bf16.vlgmr.msra.gmra.mrb[64].mxu1 %v2751_v43 }
 0x45b   :  { %v2732_v17 = vadd.f32 %v5440_v35, %v2709_v3  ;;  %v2747_v40 = vmax.f32 %v2731_v39, 0.0  ;;  %3656 = vmatpush3.bf16.msra.mxu0 %v4126_v2  ;;  %v4128_v35 = vld [vmem:[%s5529_s7 + $0x18] sm:$0xff]  }
 0x45c   :  { %3657 = vmatprep.subr.bf16.mxu0 %v4127_v62 }
 0x45d   :  { %v2748_v7 = vmax.f32 %v2732_v17, 0.0 }
 0x45f   :  { %v2756_v45 = vpack.c.bf16 %v2748_v7, %v2747_v40  ;;  %3658 = vmatpush3.bf16.msra.mxu0 %v4127_v62 }
 0x460   :  { %3659 = vmatprep.subr.bf16.mxu0 %v4128_v35 }
 0x461   :  { %3109 = vmatprep.mubr.bf16.mxu1 %v2756_v45 }
 0x462   :  { %3110 = vmatmul.mubr.bf16.gmra.mrb[68].mxu1 %v2755_v26 }
 0x463   :  { %3660 = vmatpush3.bf16.msra.mxu0 %v4128_v35 }
 0x464   :  { %3661 = vmatprep.subr.bf16.mxu0 %v4129_v28 }
 0x467   :  { %3662 = vmatpush3.bf16.msra.mxu0 %v4129_v28 }
 0x468   :  { %3663 = vmatprep.subr.bf16.mxu0 %v4130_v63 }
 0x46b   :  { %3664 = vmatpush3.bf16.msra.mxu0 %v4130_v63 }
 0x46c   :  { %3665 = vmatprep.subr.bf16.mxu0 %v4131_v5 }
 0x46f   :  { %3666 = vmatpush3.bf16.msra.mxu0 %v4131_v5 }
 0x470   :  { %3667 = vmatprep.subr.bf16.mxu0 %v4132_v9 }
 0x473   :  { %3668 = vmatpush3.bf16.msra.mxu0 %v4132_v9 }
 0x50d   :  { %v3603_v21 = vpop.f32.mrb[192].mxu0 }
 0x50e   :  { %v3604_v29 = vpop.f32.mrb[193].mxu0 }
 0x50f   :  { %v3605_v23 = vadd.f32 %v3604_v29, %v3603_v21  ;;  %v3606_v49 = vpop.f32.mrb[194].mxu0 }
 0x510   :  { %v3607_v6 = vpop.f32.mrb[195].mxu0 }
 0x511   :  { %v3608_v32 = vadd.f32 %v3607_v6, %v3606_v49  ;;  %v3055_v60 = vadd.f32 %v3605_v23, %v3545_v38 }
 0x513   :  { %v3058_v42 = vadd.f32 %v3608_v32, %v3545_v38 }
 0x515   :  { %v3609_v44 = vpop.f32.mrb[196].mxu0 }
 0x516   :  { %v3610_v47 = vpop.f32.mrb[197].mxu0 }
 0x517   :  { %v3611_v41 = vadd.f32 %v3610_v47, %v3609_v44  ;;  %v3612_v0 = vpop.f32.mrb[198].mxu0 }
 0x518   :  { %v3613_v54 = vpop.f32.mrb[199].mxu0 }
 0x519   :  { %v3614_v56 = vadd.f32 %v3613_v54, %v3612_v0  ;;  %v3063_v18 = vadd.f32 %v3611_v41, %v3545_v38 }
 0x51b   :  { %v3066_v30 = vadd.f32 %v3614_v56, %v3545_v38 }
 0x52d   :  { %v3631_v31 = vpop.f32.mrb[64].mxu1 }
 0x52e   :  { %v3632_v61 = vpop.f32.mrb[65].mxu1 }
 0x52f   :  { %v3633_v58 = vadd.f32 %v3632_v61, %v3631_v31  ;;  %v3634_v43 = vpop.f32.mrb[66].mxu1 }
 0x530   :  { %v3635_v34 = vpop.f32.mrb[67].mxu1 }
 0x531   :  { %v3104_v15 = vadd.f32 %v3633_v58, %v3055_v60  ;;  %v3636_v46 = vadd.f32 %v3635_v34, %v3634_v43 }
 0x533   :  { %v3107_v24 = vadd.f32 %v3636_v46, %v3058_v42  ;;  %v3118_v52 = vmax.f32 %v3104_v15, 0.0 }
 0x535   :  { %v3119_v1 = vmax.f32 %v3107_v24, 0.0  ;;  %v3637_v25 = vpop.f32.mrb[68].mxu1 }
 0x536   :  { %v3638_v50 = vpop.f32.mrb[69].mxu1 }
 0x537   :  { %v3639_v4 = vadd.f32 %v3638_v50, %v3637_v25  ;;  %v3640_v20 = vpop.f32.mrb[70].mxu1  ;;  %v3122_v51 = vpack.c.bf16 %v3119_v1, %v3118_v52 }
 0x538   :  { %v3641_v12 = vpop.f32.mrb[71].mxu1 }
 0x539   :  { %v3112_v33 = vadd.f32 %v3639_v4, %v3063_v18  ;;  %v3642_v26 = vadd.f32 %v3641_v12, %v3640_v20  ;;  %3669 = vmatprep.mubr.bf16.mxu0 %v3122_v51 }
 0x53b   :  { %v3115_v14 = vadd.f32 %v3642_v26, %v3066_v30  ;;  %v3120_v36 = vmax.f32 %v3112_v33, 0.0 }
 0x53d   :  { %v3121_v19 = vmax.f32 %v3115_v14, 0.0 }
 0x53f   :  { %v3123_v27 = vpack.c.bf16 %v3121_v19, %v3120_v36 }
 0x541   :  { %3670 = vmatmul.mubr.bf16.vlgmr.msra.gmra.mrb[200].mxu0 %v3123_v27 }
 0x614   :  { %v3671_v55 = vpop.f32.mrb[200].mxu0 }
 0x615   :  { %v3238_v16 = vadd.f32 %v3671_v55, %v3578_v48  ;;  %v3229_v11 = vpop.f32.mrb[201].mxu0 }
 0x616   :  { %v3230_v53 = vadd.f32 %v3578_v48, %v3229_v11  ;;  %v3672_v57 = vpop.f32.mrb[202].mxu0 }
 0x617   :  { %3248 = vmax.xlane.f32.xlu1 %v3238_v16  ;;  %v3232_v13 = vpop.f32.mrb[203].mxu0  ;;  %v3241_v8 = vadd.f32 %v3672_v57, %v3578_v48 }
 0x618   :  { %3244 = vmax.xlane.f32.xlu0 %v3230_v53  ;;  %v3233_v22 = vadd.f32 %v3578_v48, %v3232_v13 }
 0x61b   :  { %3250 = vmax.xlane.f32.xlu1 %v3241_v8 }
 0x61c   :  { %3246 = vmax.xlane.f32.xlu0 %v3233_v22 }
 0x6a4   :  { %v3249_v10 = vpop.xlane.xlu1 %3248 }
 0x6a5   :  { %v3254_v59 = vsub.f32 %v3238_v16, %v3249_v10  ;;  %v3245_v39 = vpop.xlane.xlu0 %3244 }
 0x6a6   :  { %v3252_v3 = vsub.f32 %v3230_v53, %v3245_v39 }
 0x6a7   :  { %v3260_v7 = vmul.f32 1.442695, %v3254_v59 }
 0x6a8   :  { %v3256_v17 = vmul.f32 1.442695, %v3252_v3  ;;  %v3251_v40 = vpop.xlane.xlu1 %3250 }
 0x6a9   :  { %v3247_v45 = vpop.xlane.xlu0 %3246  ;;  %v3255_v37 = vsub.f32 %v3241_v8, %v3251_v40 }
 0x6aa   :  { %4133 = vpow2.f32 %v3256_v17  ;;  %v3253_v2 = vsub.f32 %v3233_v22, %v3247_v45 }
 0x6ab   :  { %4135 = vpow2.f32 %v3260_v7  ;;  %v3262_v35 = vmul.f32 1.442695, %v3255_v37 }
 0x6ac   :  { %v3258_v62 = vmul.f32 1.442695, %v3253_v2 }
 0x6ae   :  { %4137 = vpow2.f32 %v3258_v62 }
 0x6af   :  { %4139 = vpow2.f32 %v3262_v35 }
 0x6b4   :  { %v4134_v28 = vpop.eup %4133 }
 0x6b5   :  { %3264 = vadd.xlane.f32.xlu0 %v4134_v28  ;;  %v4136_v63 = vpop.eup %4135 }
 0x6b8   :  { %v4138_v5 = vpop.eup %4137 }
 0x6b9   :  { %3268 = vadd.xlane.f32.xlu0 %v4136_v63  ;;  %3266 = vadd.xlane.f32.xlu1 %v4138_v5  ;;  %v4140_v9 = vpop.eup %4139 }
 0x6bd   :  { %3270 = vadd.xlane.f32.xlu1 %v4140_v9 }
 0x742   :  { %v3265_v21 = vpop.xlane.xlu0 %3264 }
 0x743   :  { %4141 = vrcp.f32 %v3265_v21 }
 0x746   :  { %v3267_v29 = vpop.xlane.xlu1 %3266  ;;  %v3269_v23 = vpop.xlane.xlu0 %3268 }
 0x747   :  { %4143 = vrcp.f32 %v3267_v29 }
 0x748   :  { %4145 = vrcp.f32 %v3269_v23 }
 0x74a   :  { %v3271_v49 = vpop.xlane.xlu1 %3270 }
 0x74b   :  { %4147 = vrcp.f32 %v3271_v49 }
 0x74d   :  { %v4142_v6 = vpop.eup %4141 }
 0x74e   :  { %v3276_v32 = vmul.f32 %v4142_v6, %v3265_v21 }
 0x750   :  { %v3280_v44 = vsub.f32 2.0, %v3276_v32 }
 0x751   :  { %v4144_v47 = vpop.eup %4143 }
 0x752   :  { %v4146_v41 = vpop.eup %4145  ;;  %v3284_v0 = vmul.f32 %v4142_v6, %v3280_v44  ;;  %v3277_v54 = vmul.f32 %v4144_v47, %v3267_v29 }
 0x753   :  { %v3278_v56 = vmul.f32 %v4146_v41, %v3269_v23 }
 0x754   :  { %v3288_v38 = vmul.f32 %v4134_v28, %v3284_v0  ;;  %v3281_v31 = vsub.f32 2.0, %v3277_v54 }
 0x755   :  { %v4148_v61 = vpop.eup %4147  ;;  %v3282_v60 = vsub.f32 2.0, %v3278_v56 }
 0x756   :  { %3292 = vst [vmem:[%s5532_s9] sm:$0xff] %v3288_v38  ;;  %v3285_v58 = vmul.f32 %v4144_v47, %v3281_v31  ;;  %v3279_v43 = vmul.f32 %v4148_v61, %v3271_v49 }
 0x757   :  { %v3286_v34 = vmul.f32 %v4146_v41, %v3282_v60 }
 0x758   :  { %v3289_v42 = vmul.f32 %v4138_v5, %v3285_v58  ;;  %v3283_v15 = vsub.f32 2.0, %v3279_v43 }
 0x759   :  { %v3290_v46 = vmul.f32 %v4136_v63, %v3286_v34 }
 0x75a   :  { %3293 = vst [vmem:[%s5532_s9 + $0x8] sm:$0xff] %v3289_v42  ;;  %v3287_v24 = vmul.f32 %v4148_v61, %v3283_v15 }
 0x75b   :  { %3294 = vst [vmem:[%s5532_s9 + $0x10] sm:$0xff] %v3290_v46 }
 0x75c   :  { %v3291_v52 = vmul.f32 %v4140_v9, %v3287_v24 }
 0x75e   :  { %3295 = vst [vmem:[%s5532_s9 + $0x18] sm:$0xff] %v3291_v52 }

</bundles_post_ra>
